<compile_context>
chip_gen: v6e
topology: v6e:2x2x1
jax: 0.10.0
libtpu: 0.0.40
codegen_flags: <defaults>
</compile_context>

<pallas_src>
import jax
import jax.numpy as jnp
from jax import lax
from jax.experimental import pallas as pl
from jax.experimental.pallas import tpu as pltpu


def _hswish(y):
    # h_swish: y * relu6(y + 3) / 6
    return y * jnp.clip(y + 3.0, 0.0, 6.0) * (1.0 / 6.0)


def _coord_att_kernel(x_ref, w1_ref, b1_ref, wh_ref, bh_ref, ww_ref, bw_ref,
                      o_ref):
    """One batch tile: x block (B, C, H, W) -> out block (B, H, C, W)."""
    bsz, c, h, w = x_ref.shape
    mip = w1_ref.shape[0]
    prec = lax.Precision.HIGHEST

    x = x_ref[...].astype(jnp.float32)                     # (B, C, H, W)

    # Adaptive average pools (exact reductions; no constant matrices needed).
    x_h = jnp.mean(x, axis=3)                              # (B, C, H)
    x_w = jnp.mean(x, axis=2)                              # (B, C, W)

    # conv1 (1x1) with eval-BN + bias pre-folded, then h_swish.  A 1x1 conv on
    # the concat [x_h; x_w] equals the conv applied to each branch, so the
    # lane-misaligned concat/split is never materialized.  Batched across the
    # tile with a single dot_general per branch (batch dim = B).
    w1b = jnp.broadcast_to(w1_ref[...], (bsz, mip, c))
    y_h = jnp.einsum('bmc,bch->bmh', w1b, x_h,
                     preferred_element_type=jnp.float32, precision=prec)
    y_w = jnp.einsum('bmc,bcw->bmw', w1b, x_w,
                     preferred_element_type=jnp.float32, precision=prec)
    y_h = _hswish(y_h + b1_ref[...])
    y_w = _hswish(y_w + b1_ref[...])

    # conv_h / conv_w (1x1) + sigmoid -> attention gates (tiny matmuls).
    whb = jnp.broadcast_to(wh_ref[...], (bsz, c, mip))
    wwb = jnp.broadcast_to(ww_ref[...], (bsz, c, mip))
    a_h = jax.nn.sigmoid(
        jnp.einsum('bom,bmh->boh', whb, y_h,
                   preferred_element_type=jnp.float32, precision=prec)
        + bh_ref[...])                                     # (B, C, H)
    a_w = jax.nn.sigmoid(
        jnp.einsum('bom,bmw->bow', wwb, y_w,
                   preferred_element_type=jnp.float32, precision=prec)
        + bw_ref[...])                                     # (B, C, W)

    # Gate in x's native layout: one dense, batched VPU multiply chain.
    # a_w broadcasts over H (sublanes), a_h over W (lanes) -> no expansion
    # matmuls and no extra (C, H*W) temporaries.
    g = x * a_w[:, :, None, :] * a_h[:, :, :, None]        # (B, C, H, W)

    # Final rearrange 'n h c w -> n c h w' of an NCHW tensor == C <-> H swap.
    # Done ONCE per tile as a single batched relayout (minor dim W intact).
    o_ref[...] = jnp.transpose(g, (0, 2, 1, 3)).astype(o_ref.dtype)


def _round_up(v, m):
    return (v + m - 1) // m * m


def _vmem_limit_bytes():
    """Generation-aware VMEM limit (128 MiB on v5e/v6e, 64 MiB on v7x)."""
    cap = 64 * 1024 * 1024
    try:
        info = pltpu.get_tpu_info()
        cap = int(getattr(info, "vmem_capacity_bytes", cap)) or cap
    except Exception:
        pass
    # ~25% headroom for compiler-internal scratch, hard cap at 96 MiB.
    return min(cap * 3 // 4, 96 * 1024 * 1024)


def _num_tensorcores():
    """Best-effort TensorCore count per chip (defaults to 1)."""
    try:
        info = pltpu.get_tpu_info()
        for attr in ("num_cores", "tensorcore_count", "num_tensorcores"):
            v = getattr(info, attr, None)
            if v:
                return int(v)
    except Exception:
        pass
    try:
        return int(getattr(jax.devices()[0], "num_cores", 1)) or 1
    except Exception:
        return 1


def _pick_batch_tile(n, c, h, w, in_itemsize, out_itemsize, vmem_budget,
                     num_cores):
    """Largest batch tile whose VMEM footprint (with (8,128) layout padding,
    double-buffered I/O blocks and f32 temporaries) fits the budget."""
    hp = _round_up(h, 8)
    wp = _round_up(w, 128)
    cp = _round_up(c, 8)
    x_blk = c * hp * wp * in_itemsize            # (C, H, W) tile, padded layout
    o_blk = h * cp * wp * out_itemsize           # (H, C, W) tile, padded layout
    f32_tmp = 3 * c * hp * wp * 4                # x (f32), gated, transposed copy
    per_sample = 2 * x_blk + 2 * o_blk + f32_tmp # 2x = pipeline double-buffering
    cap = max(1, int(vmem_budget) // per_sample)
    if num_cores > 1 and n >= 2:
        # Leave >= 2 grid steps so both TensorCores get work (v7x megacore).
        cap = min(cap, pl.cdiv(n, 2))
    b_tile = max(1, min(cap, n))
    n_pad = pl.cdiv(n, b_tile) * b_tile
    return int(b_tile), int(n_pad)


def coord_att_forward(x, params):
    """x: (N, C, H, W).  Returns (N, H, C, W), matching the module's final
    rearrange ('n h c w -> n c h w' applied to an NCHW tensor swaps C and H)."""
    if x.shape[2] == 1:
        # rearrange 'n c h w -> n h c w' when H == 1 (matches the module).
        x = jnp.transpose(x, (0, 2, 1, 3))
    n, c, h, w = x.shape

    w1, b1, bn_scale, bn_shift, wh, bh, ww, bw = params
    mip = w1.shape[0]
    assert wh.shape[0] == c and ww.shape[0] == c, \
        "broadcasting in the module requires out_channels == in_channels"

    # Fold eval-mode BatchNorm + conv1 bias into the conv1 weight/bias.
    w1_eff = (bn_scale * w1).astype(jnp.float32)               # (mip, C)
    b1_eff = (bn_scale * b1 + bn_shift).astype(jnp.float32)    # (mip, 1)

    vmem_limit = _vmem_limit_bytes()
    b_tile, n_pad = _pick_batch_tile(
        n, c, h, w, x.dtype.itemsize, x.dtype.itemsize,
        vmem_budget=vmem_limit // 2, num_cores=_num_tensorcores())

    x_in = x
    if n_pad != n:
        x_in = jnp.pad(x, ((0, n_pad - n), (0, 0), (0, 0), (0, 0)))

    grid = (n_pad // b_tile,)
    full2d = lambda i: (0, 0)

    out = pl.pallas_call(
        _coord_att_kernel,
        out_shape=jax.ShapeDtypeStruct((n_pad, h, c, w), x.dtype),
        grid=grid,
        in_specs=[
            pl.BlockSpec((b_tile, c, h, w), lambda i: (i, 0, 0, 0)),  # x
            pl.BlockSpec((mip, c), full2d),    # conv1 weight (BN folded)
            pl.BlockSpec((mip, 1), full2d),    # conv1 bias   (BN folded)
            pl.BlockSpec((c, mip), full2d),    # conv_h weight
            pl.BlockSpec((c, 1), full2d),      # conv_h bias
            pl.BlockSpec((c, mip), full2d),    # conv_w weight
            pl.BlockSpec((c, 1), full2d),      # conv_w bias
        ],
        out_specs=pl.BlockSpec((b_tile, h, c, w), lambda i: (i, 0, 0, 0)),
        compiler_params=pltpu.CompilerParams(
            dimension_semantics=("parallel",),
            vmem_limit_bytes=vmem_limit),
    )(x_in, w1_eff, b1_eff, wh, bh, ww, bw)

    return out[:n] if n_pad != n else out


def make_params(in_channels, out_channels, reduction=32, key=None):
    """Deterministic synthetic parameters matching CoordAtt.__init__ shapes."""
    mip = max(8, in_channels // reduction)
    keys = jax.random.split(key, 9)
    # conv weights are (out, in, 1, 1) in PyTorch; stored here as (out, in).
    w1 = jax.random.normal(keys[0], (mip, in_channels), jnp.float32) * 0.5
    b1 = jax.random.normal(keys[1], (mip, 1), jnp.float32) * 0.1
    # BatchNorm2d params (eval mode): gamma, beta, running_mean, running_var.
    gamma = 1.0 + 0.1 * jax.random.normal(keys[2], (mip, 1), jnp.float32)
    beta = 0.1 * jax.random.normal(keys[3], (mip, 1), jnp.float32)
    r_mean = 0.1 * jax.random.normal(keys[4], (mip, 1), jnp.float32)
    r_var = 1.0 + 0.1 * jax.random.uniform(keys[5], (mip, 1), jnp.float32)
    eps = 1e-5
    bn_scale = gamma / jnp.sqrt(r_var + eps)
    bn_shift = beta - r_mean * bn_scale
    wh = jax.random.normal(keys[6], (out_channels, mip), jnp.float32) * 0.5
    bh = jax.random.normal(keys[7], (out_channels, 1), jnp.float32) * 0.1
    ww = jax.random.normal(keys[8], (out_channels, mip), jnp.float32) * 0.5
    bw = jnp.zeros((out_channels, 1), jnp.float32)
    return (w1, b1, bn_scale, bn_shift, wh, bh, ww, bw)


def ref_coord_att(x, params):
    """Pure-JAX reference (unfused BN) for validating the kernel."""
    if x.shape[2] == 1:
        x = jnp.transpose(x, (0, 2, 1, 3))
    n, c, h, w = x.shape
    w1, b1, bns, bnb, wh, bh, ww, bw = params
    prec = lax.Precision.HIGHEST
    x_h = jnp.mean(x, axis=3)                               # (n, c, h)
    x_w = jnp.mean(x, axis=2)                               # (n, c, w)
    y = jnp.concatenate([x_h, x_w], axis=2)                 # (n, c, h+w)
    y = jnp.einsum('mc,ncs->nms', w1, y, precision=prec) + b1[None]
    y = y * bns[None] + bnb[None]                           # eval BatchNorm
    y = y * jnp.clip(y + 3.0, 0.0, 6.0) / 6.0               # h_swish
    y_h, y_w = y[:, :, :h], y[:, :, h:]
    a_h = jax.nn.sigmoid(jnp.einsum('om,nms->nos', wh, y_h, precision=prec) + bh[None])
    a_w = jax.nn.sigmoid(jnp.einsum('om,nms->nos', ww, y_w, precision=prec) + bw[None])
    out = x * a_w[:, :, None, :] * a_h[:, :, :, None]
    return jnp.transpose(out, (0, 2, 1, 3))                 # 'n h c w -> n c h w'


if __name__ == "__main__":
    key = jax.random.PRNGKey(0)
    kx, kp = jax.random.split(key)

    N, C, H, W = 2, 4, 16, 16
    x = jax.random.normal(kx, (N, C, H, W), jnp.float32)
    params = make_params(in_channels=C, out_channels=C, reduction=32, key=kp)

    out = jax.block_until_ready(coord_att_forward(x, params))
    ref = ref_coord_att(x, params)

    assert out.shape == (N, H, C, W), out.shape
    assert jnp.allclose(out, ref, atol=1e-4, rtol=1e-4), "mismatch vs JAX reference"

    print("KERNEL_OK")
</pallas_src>

<mosaic_0001>
module attributes {stable_mosaic.version = 11 : i64} {
  func.func @_coord_att_kernel(%arg0: i32, %arg1: memref<2x4x16x16xf32, #tpu.memory_space<vmem>>, %arg2: memref<8x4xf32, #tpu.memory_space<vmem>>, %arg3: memref<8x1xf32, #tpu.memory_space<vmem>>, %arg4: memref<4x8xf32, #tpu.memory_space<vmem>>, %arg5: memref<4x1xf32, #tpu.memory_space<vmem>>, %arg6: memref<4x8xf32, #tpu.memory_space<vmem>>, %arg7: memref<4x1xf32, #tpu.memory_space<vmem>>, %arg8: memref<2x16x4x16xf32, #tpu.memory_space<vmem>>) attributes {dimension_semantics = [#tpu.dimension_semantics<parallel>], iteration_bounds = array<i64: 1>, scalar_prefetch = 0 : i64, scratch_operands = 0 : i64, tpu.core_type = #tpu.core_type<tc>, window_params = [{transform_indices = @transform_0, window_bounds = array<i64: 2, 4, 16, 16>}, {pipeline_mode = #tpu.pipeline_mode<synchronous>, transform_indices = @transform_1, window_bounds = array<i64: 8, 4>}, {pipeline_mode = #tpu.pipeline_mode<synchronous>, transform_indices = @transform_2, window_bounds = array<i64: 8, 1>}, {pipeline_mode = #tpu.pipeline_mode<synchronous>, transform_indices = @transform_3, window_bounds = array<i64: 4, 8>}, {pipeline_mode = #tpu.pipeline_mode<synchronous>, transform_indices = @transform_4, window_bounds = array<i64: 4, 1>}, {pipeline_mode = #tpu.pipeline_mode<synchronous>, transform_indices = @transform_5, window_bounds = array<i64: 4, 8>}, {pipeline_mode = #tpu.pipeline_mode<synchronous>, transform_indices = @transform_6, window_bounds = array<i64: 4, 1>}, {transform_indices = @transform_7, window_bounds = array<i64: 2, 16, 4, 16>}]} {
    %c0 = arith.constant 0 : index
    %c0_0 = arith.constant 0 : index
    %c0_1 = arith.constant 0 : index
    %c0_2 = arith.constant 0 : index
    %0 = vector.load %arg1[%c0, %c0_0, %c0_1, %c0_2] : memref<2x4x16x16xf32, #tpu.memory_space<vmem>>, vector<2x4x16x16xf32>
    %cst = arith.constant dense<0.000000e+00> : vector<2x4x16xf32>
    %1 = vector.multi_reduction <add>, %0, %cst [3] : vector<2x4x16x16xf32> to vector<2x4x16xf32>
    %cst_3 = arith.constant 1.600000e+01 : f32
    %2 = vector.broadcast %cst_3 : f32 to vector<2x4x16xf32>
    %3 = arith.divf %1, %2 : vector<2x4x16xf32>
    %cst_4 = arith.constant dense<0.000000e+00> : vector<2x4x16xf32>
    %4 = vector.multi_reduction <add>, %0, %cst_4 [2] : vector<2x4x16x16xf32> to vector<2x4x16xf32>
    %cst_5 = arith.constant 1.600000e+01 : f32
    %5 = vector.broadcast %cst_5 : f32 to vector<2x4x16xf32>
    %6 = arith.divf %4, %5 : vector<2x4x16xf32>
    %c0_6 = arith.constant 0 : index
    %c0_7 = arith.constant 0 : index
    %7 = vector.load %arg2[%c0_6, %c0_7] : memref<8x4xf32, #tpu.memory_space<vmem>>, vector<8x4xf32>
    %8 = vector.shape_cast %7 : vector<8x4xf32> to vector<1x8x4xf32>
    %9 = vector.broadcast %8 : vector<1x8x4xf32> to vector<2x8x4xf32>
    "tpu.trace_start"() <{level = 10 : i32, message = "bmc,bch->bmh"}> : () -> ()
    %cst_8 = arith.constant dense<0.000000e+00> : vector<2x8x16xf32>
    %10 = tpu.matmul %9, %3, %cst_8 {dimension_numbers = #tpu.dot_dimension_numbers<[2], [1], [1], [2], [0, 0, 0, 1, 1, 2], [0], [0]>, precision = #tpu.contract_precision<fp32>} : vector<2x8x4xf32>, vector<2x4x16xf32>, vector<2x8x16xf32> -> vector<2x8x16xf32>
    "tpu.trace_stop"() : () -> ()
    "tpu.trace_start"() <{level = 10 : i32, message = "bmc,bcw->bmw"}> : () -> ()
    %cst_9 = arith.constant dense<0.000000e+00> : vector<2x8x16xf32>
    %11 = tpu.matmul %9, %6, %cst_9 {dimension_numbers = #tpu.dot_dimension_numbers<[2], [1], [1], [2], [0, 0, 0, 1, 1, 2], [0], [0]>, precision = #tpu.contract_precision<fp32>} : vector<2x8x4xf32>, vector<2x4x16xf32>, vector<2x8x16xf32> -> vector<2x8x16xf32>
    "tpu.trace_stop"() : () -> ()
    %c0_10 = arith.constant 0 : index
    %c0_11 = arith.constant 0 : index
    %12 = vector.load %arg3[%c0_10, %c0_11] : memref<8x1xf32, #tpu.memory_space<vmem>>, vector<8x1xf32>
    %13 = vector.shape_cast %12 : vector<8x1xf32> to vector<1x8x1xf32>
    %14 = vector.broadcast %13 : vector<1x8x1xf32> to vector<2x8x16xf32>
    %15 = arith.addf %10, %14 : vector<2x8x16xf32>
    %cst_12 = arith.constant 3.000000e+00 : f32
    %16 = vector.broadcast %cst_12 : f32 to vector<2x8x16xf32>
    %17 = arith.addf %15, %16 : vector<2x8x16xf32>
    %cst_13 = arith.constant 0.000000e+00 : f32
    %cst_14 = arith.constant 6.000000e+00 : f32
    %18 = vector.broadcast %cst_13 : f32 to vector<2x8x16xf32>
    %19 = arith.maximumf %18, %17 : vector<2x8x16xf32>
    %20 = vector.broadcast %cst_14 : f32 to vector<2x8x16xf32>
    %21 = arith.minimumf %20, %19 : vector<2x8x16xf32>
    %22 = arith.mulf %15, %21 : vector<2x8x16xf32>
    %cst_15 = arith.constant 0.166666672 : f32
    %23 = vector.broadcast %cst_15 : f32 to vector<2x8x16xf32>
    %24 = arith.mulf %22, %23 : vector<2x8x16xf32>
    %c0_16 = arith.constant 0 : index
    %c0_17 = arith.constant 0 : index
    %25 = vector.load %arg3[%c0_16, %c0_17] : memref<8x1xf32, #tpu.memory_space<vmem>>, vector<8x1xf32>
    %26 = vector.shape_cast %25 : vector<8x1xf32> to vector<1x8x1xf32>
    %27 = vector.broadcast %26 : vector<1x8x1xf32> to vector<2x8x16xf32>
    %28 = arith.addf %11, %27 : vector<2x8x16xf32>
    %cst_18 = arith.constant 3.000000e+00 : f32
    %29 = vector.broadcast %cst_18 : f32 to vector<2x8x16xf32>
    %30 = arith.addf %28, %29 : vector<2x8x16xf32>
    %cst_19 = arith.constant 0.000000e+00 : f32
    %cst_20 = arith.constant 6.000000e+00 : f32
    %31 = vector.broadcast %cst_19 : f32 to vector<2x8x16xf32>
    %32 = arith.maximumf %31, %30 : vector<2x8x16xf32>
    %33 = vector.broadcast %cst_20 : f32 to vector<2x8x16xf32>
    %34 = arith.minimumf %33, %32 : vector<2x8x16xf32>
    %35 = arith.mulf %28, %34 : vector<2x8x16xf32>
    %cst_21 = arith.constant 0.166666672 : f32
    %36 = vector.broadcast %cst_21 : f32 to vector<2x8x16xf32>
    %37 = arith.mulf %35, %36 : vector<2x8x16xf32>
    %c0_22 = arith.constant 0 : index
    %c0_23 = arith.constant 0 : index
    %38 = vector.load %arg4[%c0_22, %c0_23] : memref<4x8xf32, #tpu.memory_space<vmem>>, vector<4x8xf32>
    %39 = vector.shape_cast %38 : vector<4x8xf32> to vector<1x4x8xf32>
    %40 = vector.broadcast %39 : vector<1x4x8xf32> to vector<2x4x8xf32>
    %c0_24 = arith.constant 0 : index
    %c0_25 = arith.constant 0 : index
    %41 = vector.load %arg6[%c0_24, %c0_25] : memref<4x8xf32, #tpu.memory_space<vmem>>, vector<4x8xf32>
    %42 = vector.shape_cast %41 : vector<4x8xf32> to vector<1x4x8xf32>
    %43 = vector.broadcast %42 : vector<1x4x8xf32> to vector<2x4x8xf32>
    "tpu.trace_start"() <{level = 10 : i32, message = "bom,bmh->boh"}> : () -> ()
    %cst_26 = arith.constant dense<0.000000e+00> : vector<2x4x16xf32>
    %44 = tpu.matmul %40, %24, %cst_26 {dimension_numbers = #tpu.dot_dimension_numbers<[2], [1], [1], [2], [0, 0, 0, 1, 1, 2], [0], [0]>, precision = #tpu.contract_precision<fp32>} : vector<2x4x8xf32>, vector<2x8x16xf32>, vector<2x4x16xf32> -> vector<2x4x16xf32>
    "tpu.trace_stop"() : () -> ()
    %c0_27 = arith.constant 0 : index
    %c0_28 = arith.constant 0 : index
    %45 = vector.load %arg5[%c0_27, %c0_28] : memref<4x1xf32, #tpu.memory_space<vmem>>, vector<4x1xf32>
    %46 = vector.shape_cast %45 : vector<4x1xf32> to vector<1x4x1xf32>
    %47 = vector.broadcast %46 : vector<1x4x1xf32> to vector<2x4x16xf32>
    %48 = arith.addf %44, %47 : vector<2x4x16xf32>
    %49 = arith.negf %48 : vector<2x4x16xf32>
    %50 = math.exp %49 : vector<2x4x16xf32>
    %cst_29 = arith.constant 1.000000e+00 : f32
    %51 = vector.broadcast %cst_29 : f32 to vector<2x4x16xf32>
    %52 = arith.addf %51, %50 : vector<2x4x16xf32>
    %53 = arith.divf %51, %52 : vector<2x4x16xf32>
    "tpu.trace_start"() <{level = 10 : i32, message = "bom,bmw->bow"}> : () -> ()
    %cst_30 = arith.constant dense<0.000000e+00> : vector<2x4x16xf32>
    %54 = tpu.matmul %43, %37, %cst_30 {dimension_numbers = #tpu.dot_dimension_numbers<[2], [1], [1], [2], [0, 0, 0, 1, 1, 2], [0], [0]>, precision = #tpu.contract_precision<fp32>} : vector<2x4x8xf32>, vector<2x8x16xf32>, vector<2x4x16xf32> -> vector<2x4x16xf32>
    "tpu.trace_stop"() : () -> ()
    %c0_31 = arith.constant 0 : index
    %c0_32 = arith.constant 0 : index
    %55 = vector.load %arg7[%c0_31, %c0_32] : memref<4x1xf32, #tpu.memory_space<vmem>>, vector<4x1xf32>
    %56 = vector.shape_cast %55 : vector<4x1xf32> to vector<1x4x1xf32>
    %57 = vector.broadcast %56 : vector<1x4x1xf32> to vector<2x4x16xf32>
    %58 = arith.addf %54, %57 : vector<2x4x16xf32>
    %59 = arith.negf %58 : vector<2x4x16xf32>
    %60 = math.exp %59 : vector<2x4x16xf32>
    %cst_33 = arith.constant 1.000000e+00 : f32
    %61 = vector.broadcast %cst_33 : f32 to vector<2x4x16xf32>
    %62 = arith.addf %61, %60 : vector<2x4x16xf32>
    %63 = arith.divf %61, %62 : vector<2x4x16xf32>
    %64 = vector.shape_cast %63 : vector<2x4x16xf32> to vector<2x4x1x16xf32>
    %65 = vector.broadcast %64 : vector<2x4x1x16xf32> to vector<2x4x16x16xf32>
    %66 = arith.mulf %0, %65 : vector<2x4x16x16xf32>
    %67 = vector.shape_cast %53 : vector<2x4x16xf32> to vector<2x4x16x1xf32>
    %68 = vector.broadcast %67 : vector<2x4x16x1xf32> to vector<2x4x16x16xf32>
    %69 = arith.mulf %66, %68 : vector<2x4x16x16xf32>
    %70 = tpu.transpose %69, [0, 2, 1, 3] : vector<2x4x16x16xf32> -> vector<2x16x4x16xf32>
    %c0_34 = arith.constant 0 : index
    %c0_35 = arith.constant 0 : index
    %c0_36 = arith.constant 0 : index
    %c0_37 = arith.constant 0 : index
    %71 = vector.load %arg8[%c0_34, %c0_35, %c0_36, %c0_37] : memref<2x16x4x16xf32, #tpu.memory_space<vmem>>, vector<2x16x4x16xf32>
    tpu.vector_store %arg8[%c0_34, %c0_35, %c0_36, %c0_37], %70 {strides = array<i32>} : memref<2x16x4x16xf32, #tpu.memory_space<vmem>>, vector<2x16x4x16xf32>,
    return
  }
  func.func @transform_0(%arg0: i32) -> (i32, i32, i32, i32) {
    %c0_i32 = arith.constant 0 : i32
    %c0_i32_0 = arith.constant 0 : i32
    %c0_i32_1 = arith.constant 0 : i32
    %c0_i32_2 = arith.constant 0 : i32
    return %arg0, %c0_i32, %c0_i32_0, %c0_i32_1 : i32, i32, i32, i32
  }
  func.func @transform_1(%arg0: i32) -> (i32, i32) {
    %c0_i32 = arith.constant 0 : i32
    %c0_i32_0 = arith.constant 0 : i32
    %c0_i32_1 = arith.constant 0 : i32
    return %c0_i32, %c0_i32_0 : i32, i32
  }
  func.func @transform_2(%arg0: i32) -> (i32, i32) {
    %c0_i32 = arith.constant 0 : i32
    %c0_i32_0 = arith.constant 0 : i32
    %c0_i32_1 = arith.constant 0 : i32
    return %c0_i32, %c0_i32_0 : i32, i32
  }
  func.func @transform_3(%arg0: i32) -> (i32, i32) {
    %c0_i32 = arith.constant 0 : i32
    %c0_i32_0 = arith.constant 0 : i32
    %c0_i32_1 = arith.constant 0 : i32
    return %c0_i32, %c0_i32_0 : i32, i32
  }
  func.func @transform_4(%arg0: i32) -> (i32, i32) {
    %c0_i32 = arith.constant 0 : i32
    %c0_i32_0 = arith.constant 0 : i32
    %c0_i32_1 = arith.constant 0 : i32
    return %c0_i32, %c0_i32_0 : i32, i32
  }
  func.func @transform_5(%arg0: i32) -> (i32, i32) {
    %c0_i32 = arith.constant 0 : i32
    %c0_i32_0 = arith.constant 0 : i32
    %c0_i32_1 = arith.constant 0 : i32
    return %c0_i32, %c0_i32_0 : i32, i32
  }
  func.func @transform_6(%arg0: i32) -> (i32, i32) {
    %c0_i32 = arith.constant 0 : i32
    %c0_i32_0 = arith.constant 0 : i32
    %c0_i32_1 = arith.constant 0 : i32
    return %c0_i32, %c0_i32_0 : i32, i32
  }
  func.func @transform_7(%arg0: i32) -> (i32, i32, i32, i32) {
    %c0_i32 = arith.constant 0 : i32
    %c0_i32_0 = arith.constant 0 : i32
    %c0_i32_1 = arith.constant 0 : i32
    %c0_i32_2 = arith.constant 0 : i32
    return %arg0, %c0_i32, %c0_i32_0, %c0_i32_1 : i32, i32, i32, i32
  }
}

</mosaic_0001>

<bundles_post_ra>
// kernel: tpu_custom_call.1
= control target key start
LH: loop header
LB: loop body
LE: loop exit
PB: predicated region body
PF: predicated region fallthrough
CT: control target
= control target key end

     0   :  { %12 = vsyncpa [#allocation3], 0  ;;  %s5422_s0 = inlined_call_operand.hbm [shape: f32[2,4,16,16], index: 0, kind: input, shape index: {}]   ;;  %s5423_s1 = inlined_call_operand.vmem [shape: f32[8,4], index: 1, kind: input, shape index: {}]   ;;  %s5424_s2 = inlined_call_operand.vmem [shape: f32[8,1], index: 2, kind: input, shape index: {}]   ;;  %s5425_s3 = inlined_call_operand.vmem [shape: f32[4,8], index: 3, kind: input, shape index: {}]   ;;  %s5426_s4 = inlined_call_operand.vmem [shape: f32[4,1], index: 4, kind: input, shape index: {}]   ;;  %s5427_s5 = inlined_call_operand.vmem [shape: f32[4,8], index: 5, kind: input, shape index: {}]   ;;  %s5428_s6 = inlined_call_operand.vmem [shape: f32[4,1], index: 6, kind: input, shape index: {}]   ;;  %s5429_s7 = inlined_call_operand.hbm [shape: f32[2,16,4,16], index: 7, kind: output, shape index: {}]  }
   0x1   :  { %13 = vsyncpa [#allocation4], 0  ;;  %s4917_s24 = smov [#allocation2]  }
   0x2   :  { %s19_s25 = sshll.u32 %s4917_s24, 4  ;;  %s20_s25 = int_to_ptr.vmem [resolvable:$true] %s19_s25 }
   0x3   :  { %s4881_s26 = scalar_lea.vmem %s20_s25, 2048  ;;  %p4886_p1 = scmp.lt.s32.totalorder %s20_s25, %s20_s25 }
   0x4   :  { %p4882_p0 = scmp.ne.s32.totalorder %s20_s25, %s4881_s26  ;;  %p4887_p2 = scmp.lt.s32.totalorder %s4881_s26, %s4881_s26 }
   0x6   :  { %p4888_p3 = por %p4887_p2, %p4886_p1 }
   0x8   :  { %p4889_p4 = pnand %p4888_p3, %p4882_p0 }
   0xa   :  { %4892 = shalt.err (!%p4889_p4)
}
   0xb   :  { %s4918_s27 = smov 128   ;;  %s4919_s28 = smov 8  }
   0xc   :  { %25 = dma.hbm_to_vmem [thread:$0]  %s5422_s0, 2048, %s20_s25, [#allocation3], %s4918_s27, %s4918_s27, %s4919_s28  }
   0xd   :  { %4913 = dma.done.wait [#allocation3], 2048  }
   0xe   :  { %4914 = vsyncadd [#allocation3], 4294965248  ;;  %vm57_vm0 = vcmask 130048   ;;  %v43_v0 = vld [vmem:[#allocation2 + $0x10] sm:$0xff]  ;;  %v41_v1 = vld [vmem:[#allocation2] sm:$0xff]  ;;  %vm242_vm1 = vcmask 1041409  }
   0xf   :  { %v44_v2 = vld [vmem:[#allocation2 + $0x18] sm:$0xff]  ;;  %v64_v3 = vsel %vm57_vm0, %v43_v0, 0.0  ;;  %v58_v4 = vsel %vm57_vm0, %v41_v1, 0.0  ;;  %v42_v6 = vld [vmem:[#allocation2 + $0x8] sm:$0xff]  ;;  %v45_v8 = vld [vmem:[#allocation2 + $0x20] sm:$0xff]  ;;  %vm4921_vm2 = vmmov 0  }
  0x10   :  { %v67_v5 = vsel %vm57_vm0, %v44_v2, 0.0  ;;  %v46_v7 = vld [vmem:[#allocation2 + $0x28] sm:$0xff]  ;;  %65 = vadd.xlane.f32.xlu1 %v64_v3  ;;  %59 = vadd.xlane.f32.xlu0 %v58_v4  ;;  %v61_v10 = vsel %vm57_vm0, %v42_v6, 0.0  ;;  %v70_v12 = vsel %vm57_vm0, %v45_v8, 0.0  ;;  %v48_v13 = vld [vmem:[#allocation2 + $0x38] sm:$0xff]  ;;  %v47_v14 = vld [vmem:[#allocation2 + $0x30] sm:$0xff] }
  0x11   :  { %v130_v9 = vadd.f32 %v67_v5, %v64_v3  ;;  %v73_v11 = vsel %vm57_vm0, %v46_v7, 0.0  ;;  %v50_v15 = vld [vmem:[#allocation2 + $0x48] sm:$0xff]  ;;  %v123_v16 = vadd.f32 %v61_v10, %v58_v4  ;;  %v79_v18 = vsel %vm57_vm0, %v48_v13, 0.0  ;;  %v49_v20 = vld [vmem:[#allocation2 + $0x40] sm:$0xff]  ;;  %v52_v21 = vld [vmem:[#allocation2 + $0x58] sm:$0xff] }
  0x12   :  { %v4978_v17 = vadd.f32 %v73_v11, %v70_v12  ;;  %v76_v19 = vsel %vm57_vm0, %v47_v14, 0.0  ;;  %v51_v22 = vld [vmem:[#allocation2 + $0x50] sm:$0xff]  ;;  %v85_v25 = vsel %vm57_vm0, %v50_v15, 0.0  ;;  %v82_v26 = vsel %vm57_vm0, %v49_v20, 0.0  ;;  %v54_v29 = vld [vmem:[#allocation2 + $0x68] sm:$0xff]  ;;  %v53_v33 = vld [vmem:[#allocation2 + $0x60] sm:$0xff] }
  0x13   :  { %v131_v23 = vrot.slane %v130_v9, 4  ;;  %v4982_v24 = vadd.f32 %v79_v18, %v76_v19  ;;  %v124_v27 = vrot.slane %v123_v16, 4  ;;  %v151_v28 = vadd.f32 %v85_v25, %v82_v26  ;;  %v56_v37 = vld [vmem:[#allocation2 + $0x78] sm:$0xff]  ;;  %v55_v40 = vld [vmem:[#allocation2 + $0x70] sm:$0xff] }
  0x14   :  { %68 = vadd.xlane.f32.xlu1 %v67_v5  ;;  %62 = vadd.xlane.f32.xlu0 %v61_v10  ;;  %v91_v31 = vsel %vm57_vm0, %v52_v21, 0.0  ;;  %v88_v32 = vsel %vm57_vm0, %v51_v22, 0.0  ;;  %v97_v39 = vsel %vm57_vm0, %v54_v29, 0.0  ;;  %v94_v44 = vsel %vm57_vm0, %v53_v33, 0.0 }
  0x15   :  { %v132_v30 = vadd.f32 %v131_v23, %v130_v9  ;;  %v125_v34 = vadd.f32 %v124_v27, %v123_v16  ;;  %v152_v35 = vrot.slane %v151_v28, 4  ;;  %v158_v36 = vadd.f32 %v91_v31, %v88_v32 }
  0x16   :  { %v165_v46 = vadd.f32 %v97_v39, %v94_v44  ;;  %v103_v47 = vsel %vm57_vm0, %v56_v37, 0.0  ;;  %v100_v51 = vsel %vm57_vm0, %v55_v40, 0.0  ;;  %v138_v6 = vrot.slane %v4978_v17, 4 }
  0x17   :  { %v133_v38 = vrot.slane %v132_v30, 2  ;;  %v126_v41 = vrot.slane %v125_v34, 2  ;;  %v153_v42 = vadd.f32 %v152_v35, %v151_v28  ;;  %v159_v43 = vrot.slane %v158_v36, 4 }
  0x18   :  { %74 = vadd.xlane.f32.xlu1 %v73_v11  ;;  %71 = vadd.xlane.f32.xlu0 %v70_v12  ;;  %v172_v53 = vadd.f32 %v103_v47, %v100_v51  ;;  %v145_v7 = vrot.slane %v4982_v24, 4  ;;  %v4920_v8 = vmov 0.0   ;;  %v139_v9 = vadd.f32 %v138_v6, %v4978_v17 }
  0x19   :  { %v134_v45 = vadd.f32 %v133_v38, %v132_v30  ;;  %v127_v48 = vadd.f32 %v126_v41, %v125_v34  ;;  %v154_v49 = vrot.slane %v153_v42, 2  ;;  %v160_v50 = vadd.f32 %v159_v43, %v158_v36  ;;  %4587 = vmatprep.subr.mxu0 %v4920_v8  ;;  %4592 = vmatprep.subr.mxu1 %v4920_v8 }
  0x1a   :  { %4589 = vmatprep.mubr.msk.f32.mxu0 %vm4921_vm2, %v4920_v8  ;;  %4594 = vmatprep.mubr.msk.f32.mxu1 %vm4921_vm2, %v4920_v8  ;;  %v146_v10 = vadd.f32 %v145_v7, %v4982_v24  ;;  %v140_v11 = vrot.slane %v139_v9, 2  ;;  %v166_v14 = vrot.slane %v165_v46, 4  ;;  %v173_v16 = vrot.slane %v172_v53, 4 }
  0x1b   :  { %v135_v52 = vrot.slane %v134_v45, 1  ;;  %v128_v54 = vrot.slane %v127_v48, 1  ;;  %v155_v55 = vadd.f32 %v154_v49, %v153_v42  ;;  %v161_v56 = vrot.slane %v160_v50, 2  ;;  %v187_v42 = vld [vmem:[%s5423_s1] sm:$0xff] }
  0x1c   :  { %80 = vadd.xlane.f32.xlu1 %v79_v18  ;;  %77 = vadd.xlane.f32.xlu0 %v76_v19  ;;  %v147_v12 = vrot.slane %v146_v10, 2  ;;  %v141_v13 = vadd.f32 %v140_v11, %v139_v9  ;;  %v167_v19 = vadd.f32 %v166_v14, %v165_v46  ;;  %v174_v21 = vadd.f32 %v173_v16, %v172_v53 }
  0x1d   :  { %v136_v57 = vadd.f32 %v135_v52, %v134_v45  ;;  %v129_v58 = vadd.f32 %v128_v54, %v127_v48  ;;  %v156_v59 = vrot.slane %v155_v55, 1  ;;  %v162_v60 = vadd.f32 %v161_v56, %v160_v50 }
  0x1e   :  { %v148_v15 = vadd.f32 %v147_v12, %v146_v10  ;;  %v142_v18 = vrot.slane %v141_v13, 1  ;;  %v168_v22 = vrot.slane %v167_v19, 2  ;;  %vm244_vm3 = vcmask 1042434  }
  0x1f   :  { %v180_v61 = vmul.f32 0.0625, %v136_v57  ;;  %v179_v62 = vmul.f32 0.0625, %v129_v58  ;;  %v157_v63 = vadd.f32 %v156_v59, %v155_v55  ;;  %v163_v0 = vrot.slane %v162_v60, 1 }
  0x20   :  { %86 = vadd.xlane.f32.xlu1 %v85_v25  ;;  %83 = vadd.xlane.f32.xlu0 %v82_v26  ;;  %v149_v20 = vrot.slane %v148_v15, 1  ;;  %v143_v17 = vadd.f32 %v142_v18, %v141_v13  ;;  %v175_v25 = vrot.slane %v174_v21, 2  ;;  %v169_v27 = vadd.f32 %v168_v22, %v167_v19 }
  0x21   :  { %v1210_v1 = vsel %vm242_vm1, %v180_v61, %v179_v62  ;;  %v183_v2 = vmul.f32 0.0625, %v157_v63  ;;  %v164_v3 = vadd.f32 %v163_v0, %v162_v60  ;;  %vm246_vm4 = vcmask 1043459  }
  0x22   :  { %v150_v23 = vadd.f32 %v149_v20, %v148_v15  ;;  %v181_v26 = vmul.f32 0.0625, %v143_v17  ;;  %v176_v29 = vadd.f32 %v175_v25, %v174_v21  ;;  %v170_v24 = vrot.slane %v169_v27, 1 }
  0x23   :  { %v184_v4 = vmul.f32 0.0625, %v164_v3  ;;  %v4922_v40 = vmov 0   ;;  %v202_v41 = vlaneseq  ;;  %vm248_vm5 = vcmask 31744  }
  0x24   :  { %92 = vadd.xlane.f32.xlu1 %v91_v31  ;;  %89 = vadd.xlane.f32.xlu0 %v88_v32  ;;  %v182_v28 = vmul.f32 0.0625, %v150_v23  ;;  %v1211_v30 = vsel %vm244_vm3, %v181_v26, %v1210_v1  ;;  %v177_v31 = vrot.slane %v176_v29, 1  ;;  %v171_v33 = vadd.f32 %v170_v24, %v169_v27 }
  0x25   :  { %v1665_v5 = vsel %vm242_vm1, %v184_v4, %v183_v2  ;;  %4839 = vset.pattern.permute.xlu0 %v4922_v40  ;;  %4840 = vset.pattern.permute.xlu1 %v4922_v40  ;;  %v203_v43 = vand.u32 127, %v202_v41  ;;  %v5020_v49 = vshrl.u32 %v202_v41, 7  ;;  %vm213_vm6 = vcmask 130112  }
  0x26   :  { %v5006_v32 = vsel %vm246_vm4, %v182_v28, %v1211_v30  ;;  %v178_v34 = vadd.f32 %v177_v31, %v176_v29  ;;  %v185_v35 = vmul.f32 0.0625, %v171_v33  ;;  %vm252_vm7 = vcmask 1043456  }
  0x27   :  { %v5029_v56 = vsub.s32 %v203_v43, %v5020_v49  ;;  %vm2134_vm8 = vcmask 64512   ;;  %vm4437_vm9 = vcmask 125952  }
  0x28   :  { %98 = vadd.xlane.f32.xlu1 %v97_v39  ;;  %95 = vadd.xlane.f32.xlu0 %v94_v44  ;;  %v186_v36 = vmul.f32 0.0625, %v178_v34  ;;  %v1666_v37 = vsel %vm244_vm3, %v185_v35, %v1665_v5  ;;  %v188_v39 = vld [vmem:[%s5424_s2] sm:$0xff]  ;;  %v250_v44 = vsel %vm248_vm5, %v187_v42, 0 }
  0x29   :  { %v5018_v48 = vand.u32 4294901760, %v250_v44 }
  0x2a   :  { %v5010_v38 = vsel %vm246_vm4, %v186_v36, %v1666_v37 }
  0x2b   :  { %v5026_v55 = vsub.f32 %v250_v44, %v5018_v48 }
  0x2c   :  { %104 = vadd.xlane.f32.xlu1 %v103_v47  ;;  %101 = vadd.xlane.f32.xlu0 %v100_v51  ;;  %v208_v47 = vadd.s32 4294967288, %v203_v43 }
  0x2d   :  { %v5034_v1 = vand.u32 4294901760, %v5026_v55 }
  0x2e   :  { %v5023_v52 = vsub.s32 %v208_v47, %v5020_v49 }
  0x2f   :  { %v324_v16 = vsub.f32 %v5026_v55, %v5034_v1 }
  0x31   :  { %v5052_v27 = vand.u32 4294901760, %v324_v16 }
  0x42   :  { %191 = vperm.xlu0 %4839, %v188_v39  }
  0x99   :  { %v66_v45 = vpop.xlane.xlu1 %65  ;;  %v60_v46 = vpop.xlane.xlu0 %59 }
  0x9a   :  { %v109_v57 = vmul.f32 0.0625, %v66_v45  ;;  %v107_v58 = vmul.f32 0.0625, %v60_v46 }
  0x9c   :  { %v218_v2 = vrot.slane %v109_v57, %v5029_v56  ;;  %v207_v3 = vrot.slane %v107_v58, %v5029_v56 }
  0x9d   :  { %v69_v50 = vpop.xlane.xlu1 %68  ;;  %v63_v51 = vpop.xlane.xlu0 %62 }
  0x9e   :  { %v110_v53 = vmul.f32 0.0625, %v69_v50  ;;  %v108_v54 = vmul.f32 0.0625, %v63_v51 }
  0xa0   :  { %v222_v61 = vrot.slane %v110_v53, %v5023_v52  ;;  %v212_v62 = vrot.slane %v108_v54, %v5023_v52 }
  0xa1   :  { %v75_v59 = vpop.xlane.xlu1 %74  ;;  %v72_v60 = vpop.xlane.xlu0 %71 }
  0xa2   :  { %v112_v63 = vmul.f32 0.0625, %v75_v59  ;;  %v111_v0 = vmul.f32 0.0625, %v72_v60  ;;  %v223_v9 = vsel %vm213_vm6, %v222_v61, %v218_v2  ;;  %v214_v10 = vsel %vm213_vm6, %v212_v62, %v207_v3 }
  0xa3   :  { %v243_v18 = vsel %vm242_vm1, %v223_v9, %v214_v10  ;;  %v1213_v2 = vsel %vm252_vm7, %v5006_v32, 0 }
  0xa4   :  { %v231_v4 = vrot.slane %v112_v63, %v5023_v52  ;;  %v227_v5 = vrot.slane %v111_v0, %v5029_v56 }
  0xa5   :  { %v81_v6 = vpop.xlane.xlu1 %80  ;;  %v78_v7 = vpop.xlane.xlu0 %77 }
  0xa6   :  { %v114_v11 = vmul.f32 0.0625, %v81_v6  ;;  %v113_v12 = vmul.f32 0.0625, %v78_v7  ;;  %v232_v13 = vsel %vm213_vm6, %v231_v4, %v227_v5  ;;  %v1246_v4 = vand.u32 4294901760, %v1213_v2 }
  0xa7   :  { %v245_v21 = vsel %vm244_vm3, %v232_v13, %v243_v18 }
  0xa8   :  { %v240_v14 = vrot.slane %v114_v11, %v5023_v52  ;;  %v236_v15 = vrot.slane %v113_v12, %v5029_v56  ;;  %v1323_v6 = vsub.f32 %v1213_v2, %v1246_v4  ;;  %v1668_v11 = vsel %vm252_vm7, %v5010_v38, 0 }
  0xa9   :  { %v87_v19 = vpop.xlane.xlu1 %86  ;;  %v84_v20 = vpop.xlane.xlu0 %83  ;;  %v1701_v13 = vand.u32 4294901760, %v1668_v11 }
  0xaa   :  { %v241_v17 = vsel %vm213_vm6, %v240_v14, %v236_v15  ;;  %v116_v22 = vmul.f32 0.0625, %v87_v19  ;;  %v115_v23 = vmul.f32 0.0625, %v84_v20  ;;  %v1324_v10 = vand.u32 4294901760, %v1323_v6 }
  0xab   :  { %v247_v25 = vsel %vm246_vm4, %v241_v17, %v245_v21  ;;  %v1778_v14 = vsub.f32 %v1668_v11, %v1701_v13 }
  0xac   :  { %v253_v26 = vsel %vm252_vm7, %v247_v25, 0  ;;  %v716_v30 = vrot.slane %v116_v22, %v5023_v52  ;;  %v712_v31 = vrot.slane %v115_v23, %v5029_v56  ;;  %v1325_v12 = vsub.f32 %v1323_v6, %v1324_v10  ;;  %v2126_v23 = vld [vmem:[%s5425_s3] sm:$0xf] }
  0xad   :  { %v93_v28 = vpop.xlane.xlu1 %92  ;;  %v90_v29 = vpop.xlane.xlu0 %89  ;;  %v286_v24 = vand.u32 4294901760, %v253_v26  ;;  %v1779_v15 = vand.u32 4294901760, %v1778_v14 }
  0xae   :  { %v118_v33 = vmul.f32 0.0625, %v93_v28  ;;  %v117_v34 = vmul.f32 0.0625, %v90_v29  ;;  %v717_v42 = vsel %vm213_vm6, %v716_v30, %v712_v31  ;;  %v1326_v38 = vand.u32 4294901760, %v1325_v12 }
  0xaf   :  { %4588 = vmatpush3.msra.mxu0 %v286_v24  ;;  %v363_v35 = vsub.f32 %v253_v26, %v286_v24  ;;  %v1780_v16 = vsub.f32 %v1778_v14, %v1779_v15 }
  0xb0   :  { %v725_v36 = vrot.slane %v118_v33, %v5023_v52  ;;  %v721_v37 = vrot.slane %v117_v34, %v5029_v56  ;;  %4590 = vmatmul.mubr.f32.vlgmr.msra.gmra.mxu0 %v5052_v27  ;;  %4597 = vmatprep.subr.mxu0 %v4920_v8 }
  0xb1   :  { %v99_v39 = vpop.xlane.xlu1 %98  ;;  %4598 = vmatpush3.msra.mxu0 %v363_v35  ;;  %v96_v40 = vpop.xlane.xlu0 %95  ;;  %4599 = vmatprep.mubr.msk.f32.mxu0 %vm4921_vm2, %v4920_v8  ;;  %v364_v41 = vand.u32 4294901760, %v363_v35  ;;  %v1781_v18 = vand.u32 4294901760, %v1780_v16 }
  0xb2   :  { %v726_v43 = vsel %vm213_vm6, %v725_v36, %v721_v37  ;;  %v120_v44 = vmul.f32 0.0625, %v99_v39  ;;  %v119_v45 = vmul.f32 0.0625, %v96_v40  ;;  %4607 = vmatprep.subr.mxu0 %v4920_v8 }
  0xb3   :  { %v365_v46 = vsub.f32 %v363_v35, %v364_v41  ;;  %v745_v51 = vsel %vm242_vm1, %v726_v43, %v717_v42 }
  0xb4   :  { %v734_v47 = vrot.slane %v120_v44, %v5023_v52  ;;  %v730_v50 = vrot.slane %v119_v45, %v5029_v56  ;;  %4600 = vmatmul.mubr.f32.vlgmr.msra.gmra.mxu0 %v5026_v55 }
  0xb5   :  { %4608 = vmatpush3.msra.mxu0 %v364_v41  ;;  %v105_v53 = vpop.xlane.xlu1 %104  ;;  %v102_v54 = vpop.xlane.xlu0 %101  ;;  %v366_v57 = vand.u32 4294901760, %v365_v46  ;;  %4609 = vmatprep.mubr.msk.f32.mxu0 %vm4921_vm2, %v4920_v8 }
  0xb6   :  { %v735_v58 = vsel %vm213_vm6, %v734_v47, %v730_v50  ;;  %v122_v59 = vmul.f32 0.0625, %v105_v53  ;;  %v121_v60 = vmul.f32 0.0625, %v102_v54  ;;  %4617 = vmatprep.subr.mxu0 %v4920_v8 }
  0xb7   :  { %4593 = vmatpush3.msra.mxu1 %v366_v57  ;;  %v746_v61 = vsel %vm244_vm3, %v735_v58, %v745_v51 }
  0xb8   :  { %v743_v62 = vrot.slane %v122_v59, %v5023_v52  ;;  %v739_v63 = vrot.slane %v121_v60, %v5029_v56  ;;  %4595 = vmatmul.mubr.f32.vlgmr.msra.gmra.mxu1 %v5018_v48  ;;  %4602 = vmatprep.subr.mxu1 %v4920_v8 }
  0xb9   :  { %4603 = vmatpush3.msra.mxu1 %v286_v24  ;;  %4604 = vmatprep.mubr.msk.f32.mxu1 %vm4921_vm2, %v4920_v8 }
  0xba   :  { %v744_v0 = vsel %vm213_vm6, %v743_v62, %v739_v63  ;;  %4612 = vmatprep.subr.mxu1 %v4920_v8  ;;  %4610 = vmatmul.mubr.f32.vlgmr.msra.gmra.mxu0 %v5018_v48 }
  0xbb   :  { %v747_v52 = vsel %vm246_vm4, %v744_v0, %v746_v61  ;;  %4619 = vmatprep.mubr.msk.f32.mxu0 %vm4921_vm2, %v4920_v8 }
  0xbc   :  { %4605 = vmatmul.mubr.f32.vlgmr.msra.gmra.mxu1 %v5034_v1  ;;  %v748_v56 = vsel %vm252_vm7, %v747_v52, 0 }
  0xbd   :  { %4613 = vmatpush3.msra.mxu1 %v286_v24  ;;  %4614 = vmatprep.mubr.msk.f32.mxu1 %vm4921_vm2, %v4920_v8  ;;  %v781_v3 = vand.u32 4294901760, %v748_v56  ;;  %v5176_v21 = vpop.permute.xlu0 %191 }
  0xbe   :  { %4622 = vmatprep.subr.mxu1 %v4920_v8 }
  0xbf   :  { %4618 = vmatpush3.msra.mxu0 %v781_v3  ;;  %v858_v5 = vsub.f32 %v748_v56, %v781_v3 }
  0xc0   :  { %4615 = vmatmul.mubr.f32.vlgmr.msra.gmra.mxu1 %v5018_v48  ;;  %4620 = vmatmul.mubr.f32.vlgmr.msra.gmra.mxu0 %v5052_v27 }
  0xc1   :  { %4627 = vmatprep.subr.mxu0 %v4920_v8  ;;  %4629 = vmatprep.mubr.msk.f32.mxu0 %vm4921_vm2, %v4920_v8  ;;  %v859_v32 = vand.u32 4294901760, %v858_v5 }
  0xc2   :  { %4628 = vmatpush3.msra.mxu0 %v858_v5  ;;  %4624 = vmatprep.mubr.msk.f32.mxu1 %vm4921_vm2, %v4920_v8 }
  0xc3   :  { %4637 = vmatprep.subr.mxu0 %v4920_v8  ;;  %v860_v7 = vsub.f32 %v858_v5, %v859_v32 }
  0xc4   :  { %4630 = vmatmul.mubr.f32.vlgmr.msra.gmra.mxu0 %v5026_v55 }
  0xc5   :  { %4638 = vmatpush3.msra.mxu0 %v859_v32  ;;  %v861_v9 = vand.u32 4294901760, %v860_v7  ;;  %4639 = vmatprep.mubr.msk.f32.mxu0 %vm4921_vm2, %v4920_v8 }
  0xc6   :  { %4647 = vmatprep.subr.mxu0 %v4920_v8 }
  0xc7   :  { %4623 = vmatpush3.msra.mxu1 %v861_v9 }
  0xc8   :  { %4625 = vmatmul.mubr.f32.vlgmr.msra.gmra.mxu1 %v5018_v48  ;;  %4632 = vmatprep.subr.mxu1 %v4920_v8 }
  0xc9   :  { %4640 = vmatmul.mubr.f32.vlgmr.msra.gmra.mxu0 %v5018_v48  ;;  %4633 = vmatpush3.msra.mxu1 %v781_v3 }
  0xca   :  { %4634 = vmatprep.mubr.msk.f32.mxu1 %vm4921_vm2, %v4920_v8  ;;  %4642 = vmatprep.subr.mxu1 %v4920_v8 }
  0xcb   :  { %4648 = vmatpush3.msra.mxu0 %v1246_v4  ;;  %4649 = vmatprep.mubr.msk.f32.mxu0 %vm4921_vm2, %v4920_v8 }
  0xcc   :  { %4635 = vmatmul.mubr.f32.vlgmr.msra.gmra.mxu1 %v5034_v1  ;;  %4657 = vmatprep.subr.mxu0 %v4920_v8 }
  0xcd   :  { %4643 = vmatpush3.msra.mxu1 %v781_v3  ;;  %4650 = vmatmul.mubr.f32.vlgmr.msra.gmra.mxu0 %v5052_v27 }
  0xce   :  { %4644 = vmatprep.mubr.msk.f32.mxu1 %vm4921_vm2, %v4920_v8  ;;  %4658 = vmatpush3.msra.mxu0 %v1323_v6 }
  0xcf   :  { %4659 = vmatprep.mubr.msk.f32.mxu0 %vm4921_vm2, %v4920_v8  ;;  %4652 = vmatprep.subr.mxu1 %v4920_v8 }
  0xd0   :  { %4645 = vmatmul.mubr.f32.vlgmr.msra.gmra.mxu1 %v5018_v48  ;;  %4667 = vmatprep.subr.mxu0 %v4920_v8 }
  0xd1   :  { %4660 = vmatmul.mubr.f32.vlgmr.msra.gmra.mxu0 %v5026_v55  ;;  %4653 = vmatpush3.msra.mxu1 %v1326_v38 }
  0xd2   :  { %4654 = vmatprep.mubr.msk.f32.mxu1 %vm4921_vm2, %v4920_v8  ;;  %4668 = vmatpush3.msra.mxu0 %v1324_v10 }
  0xd3   :  { %4669 = vmatprep.mubr.msk.f32.mxu0 %vm4921_vm2, %v4920_v8  ;;  %4662 = vmatprep.subr.mxu1 %v4920_v8 }
  0xd4   :  { %4655 = vmatmul.mubr.f32.vlgmr.msra.gmra.mxu1 %v5018_v48  ;;  %4677 = vmatprep.subr.mxu0 %v4920_v8 }
  0xd5   :  { %4670 = vmatmul.mubr.f32.vlgmr.msra.gmra.mxu0 %v5018_v48  ;;  %4663 = vmatpush3.msra.mxu1 %v1246_v4 }
  0xd6   :  { %4664 = vmatprep.mubr.msk.f32.mxu1 %vm4921_vm2, %v4920_v8  ;;  %4678 = vmatpush3.msra.mxu0 %v1701_v13 }
  0xd7   :  { %4679 = vmatprep.mubr.msk.f32.mxu0 %vm4921_vm2, %v4920_v8  ;;  %4672 = vmatprep.subr.mxu1 %v4920_v8 }
  0xd8   :  { %4665 = vmatmul.mubr.f32.vlgmr.msra.gmra.mxu1 %v5034_v1  ;;  %4687 = vmatprep.subr.mxu0 %v4920_v8 }
  0xd9   :  { %4680 = vmatmul.mubr.f32.vlgmr.msra.gmra.mxu0 %v5052_v27  ;;  %4673 = vmatpush3.msra.mxu1 %v1246_v4  ;;  %v2136_v27 = vsel %vm2134_vm8, %v2126_v23, 0 }
  0xda   :  { %4674 = vmatprep.mubr.msk.f32.mxu1 %vm4921_vm2, %v4920_v8  ;;  %4682 = vmatprep.subr.mxu1 %v4920_v8  ;;  %v5183_v33 = vand.u32 4294901760, %v2136_v27 }
  0xdb   :  { %4688 = vmatpush3.msra.mxu0 %v1778_v14  ;;  %4689 = vmatprep.mubr.msk.f32.mxu0 %vm4921_vm2, %v4920_v8 }
  0xdc   :  { %4675 = vmatmul.mubr.f32.vlgmr.msra.gmra.mxu1 %v5018_v48  ;;  %4697 = vmatprep.subr.mxu0 %v4920_v8  ;;  %v5186_v40 = vsub.f32 %v2136_v27, %v5183_v33 }
  0xdd   :  { %4683 = vmatpush3.msra.mxu1 %v1781_v18  ;;  %4684 = vmatprep.mubr.msk.f32.mxu1 %vm4921_vm2, %v4920_v8  ;;  %v2127_v18 = vld [vmem:[%s5427_s5] sm:$0xf]  ;;  %s4926_s5 = smov [#allocation5]  }
  0xde   :  { %4690 = vmatmul.mubr.f32.vlgmr.msra.gmra.mxu0 %v5026_v55  ;;  %4692 = vmatprep.subr.mxu1 %v4920_v8  ;;  %v2128_v55 = vld [vmem:[%s5426_s4] sm:$0xf]  ;;  %v5189_v46 = vand.u32 4294901760, %v5186_v40 }
  0xdf   :  { %4698 = vmatpush3.msra.mxu0 %v1779_v15  ;;  %4699 = vmatprep.mubr.msk.f32.mxu0 %vm4921_vm2, %v4920_v8 }
  0xe0   :  { %4685 = vmatmul.mubr.f32.vlgmr.msra.gmra.mxu1 %v5018_v48  ;;  %4707 = vmatprep.subr.mxu0 %v4920_v8  ;;  %v2207_v57 = vsub.f32 %v5186_v40, %v5189_v46 }
  0xe1   :  { %4693 = vmatpush3.msra.mxu1 %v1701_v13  ;;  %4694 = vmatprep.mubr.msk.f32.mxu1 %vm4921_vm2, %v4920_v8 }
  0xe2   :  { %4700 = vmatmul.mubr.f32.vlgmr.msra.gmra.mxu0 %v5018_v48  ;;  %4702 = vmatprep.subr.mxu1 %v4920_v8  ;;  %v5194_v52 = vand.u32 4294901760, %v2207_v57 }
  0xe3   :  { %4709 = vmatprep.mubr.msk.f32.mxu0 %vm4921_vm2, %v4920_v8  ;;  %2131 = vperm.xlu1 %4840, %v2128_v55  }
  0xe4   :  { %4695 = vmatmul.mubr.f32.vlgmr.msra.gmra.mxu1 %v5034_v1  ;;  %v3042_v1 = vld [vmem:[%s5428_s6] sm:$0xf]  ;;  %s4475_s6 = sshll.u32 %s4926_s5, 4  ;;  %s4476_s6 = int_to_ptr.vmem [resolvable:$true] %s4475_s6 }
  0xe5   :  { %4703 = vmatpush3.msra.mxu1 %v1701_v13  ;;  %4704 = vmatprep.mubr.msk.f32.mxu1 %vm4921_vm2, %v4920_v8  ;;  %s4893_s15 = scalar_lea.vmem %s4476_s6, 2048  ;;  %p4898_p6 = scmp.lt.s32.totalorder %s4476_s6, %s4476_s6 }
  0xe6   :  { %4712 = vmatprep.subr.mxu1 %v4920_v8  ;;  %p4894_p5 = scmp.ne.s32.totalorder %s4476_s6, %s4893_s15  ;;  %p4899_p7 = scmp.lt.s32.totalorder %s4893_s15, %s4893_s15 }
  0xe7   :  { %3045 = vperm.xlu1 %4840, %v3042_v1  }
  0xe8   :  { %4705 = vmatmul.mubr.f32.vlgmr.msra.gmra.mxu1 %v5018_v48  ;;  %p4900_p8 = por %p4899_p7, %p4898_p6 }
  0xe9   :  { %4714 = vmatprep.mubr.msk.f32.mxu1 %vm4921_vm2, %v4920_v8 }
  0xea   :  { %p4901_p9 = pnand %p4900_p8, %p4894_p5 }
 0x170   :  { %v327_v19 = vpop.f32.mrf.mxu0 }
 0x171   :  { %v328_v48 = vadd.f32 %v327_v19, %v5176_v21 }
 0x172   :  { %v4591_v20 = vpop.f32.mrf.mxu0 }
 0x174   :  { %v477_v17 = vpop.f32.mrf.mxu0 }
 0x176   :  { %v4601_v22 = vpop.f32.mrf.mxu0 }
 0x177   :  { %v3049_v22 = vsel %vm2134_vm8, %v2127_v18, 0 }
 0x178   :  { %v403_v25 = vpop.f32.mrf.mxu1 }
 0x179   :  { %v404_v26 = vadd.f32 %v403_v25, %v328_v48 }
 0x17a   :  { %v4596_v28 = vpop.f32.mrf.mxu1  ;;  %v625_v29 = vpop.f32.mrf.mxu0 }
 0x17b   :  { %v478_v24 = vadd.f32 %v477_v17, %v404_v26 }
 0x17c   :  { %v551_v30 = vpop.f32.mrf.mxu1  ;;  %v4611_v31 = vpop.f32.mrf.mxu0 }
 0x17d   :  { %v552_v34 = vadd.f32 %v551_v30, %v478_v24  ;;  %v5214_v30 = vand.u32 4294901760, %v3049_v22 }
 0x17e   :  { %v4606_v35 = vpop.f32.mrf.mxu1 }
 0x17f   :  { %v626_v36 = vadd.f32 %v625_v29, %v552_v34 }
 0x180   :  { %v697_v37 = vpop.f32.mrf.mxu1  ;;  %v822_v39 = vpop.f32.mrf.mxu0 }
 0x181   :  { %v698_v41 = vadd.f32 %v697_v37, %v626_v36  ;;  %v823_v53 = vadd.f32 %v822_v39, %v5176_v21 }
 0x182   :  { %v4616_v42 = vpop.f32.mrf.mxu1  ;;  %v4621_v43 = vpop.f32.mrf.mxu0 }
 0x183   :  { %v1196_v44 = vadd.f32 3.0, %v698_v41  ;;  %v5224_v42 = vsub.f32 %v3049_v22, %v5214_v30 }
 0x184   :  { %v972_v45 = vpop.f32.mrf.mxu0 }
 0x185   :  { %v1198_v47 = vmax.f32 %v1196_v44, 0.0 }
 0x186   :  { %v4631_v50 = vpop.f32.mrf.mxu0 }
 0x187   :  { %v1200_v51 = vmin.f32 %v1198_v47, 6.0 }
 0x188   :  { %v898_v54 = vpop.f32.mrf.mxu1 }
 0x189   :  { %v1202_v58 = vmul.f32 %v1200_v51, %v698_v41  ;;  %v899_v59 = vadd.f32 %v898_v54, %v823_v53  ;;  %v1120_v60 = vpop.f32.mrf.mxu0 }
 0x18a   :  { %v4626_v61 = vpop.f32.mrf.mxu1 }
 0x18b   :  { %v1204_v62 = vmul.f32 0.16666667, %v1202_v58  ;;  %v4641_v63 = vpop.f32.mrf.mxu0  ;;  %v973_v0 = vadd.f32 %v972_v45, %v899_v59  ;;  %v5234_v59 = vand.u32 4294901760, %v5224_v42 }
 0x18c   :  { %v1046_v2 = vpop.f32.mrf.mxu1 }
 0x18d   :  { %v2169_v56 = vand.u32 4294901760, %v1204_v62  ;;  %v1047_v3 = vadd.f32 %v1046_v2, %v973_v0  ;;  %v1287_v4 = vpop.f32.mrf.mxu0 }
 0x18e   :  { %v4636_v5 = vpop.f32.mrf.mxu1  ;;  %v1288_v38 = vadd.f32 %v1287_v4, %v5176_v21  ;;  %v3120_v4 = vsub.f32 %v5224_v42, %v5234_v59 }
 0x18f   :  { %v2246_v32 = vsub.f32 %v1204_v62, %v2169_v56  ;;  %v4651_v6 = vpop.f32.mrf.mxu0  ;;  %4708 = vmatpush3.msra.mxu0 %v2169_v56  ;;  %v1121_v7 = vadd.f32 %v1120_v60, %v1047_v3 }
 0x190   :  { %v1192_v9 = vpop.f32.mrf.mxu1  ;;  %4710 = vmatmul.mubr.f32.vlgmr.msra.gmra.mxu0 %v5194_v52  ;;  %4717 = vmatprep.subr.mxu0 %v4920_v8 }
 0x191   :  { %v1193_v10 = vadd.f32 %v1192_v9, %v1121_v7  ;;  %v1437_v11 = vpop.f32.mrf.mxu0  ;;  %4718 = vmatpush3.msra.mxu0 %v2246_v32  ;;  %4719 = vmatprep.mubr.msk.f32.mxu0 %vm4921_vm2, %v4920_v8  ;;  %v2247_v12 = vand.u32 4294901760, %v2246_v32 }
 0x192   :  { %v4646_v13 = vpop.f32.mrf.mxu1  ;;  %4727 = vmatprep.subr.mxu0 %v4920_v8 }
 0x193   :  { %v1197_v14 = vadd.f32 3.0, %v1193_v10  ;;  %v4661_v15 = vpop.f32.mrf.mxu0  ;;  %v2248_v16 = vsub.f32 %v2246_v32, %v2247_v12 }
 0x194   :  { %v1363_v55 = vpop.f32.mrf.mxu1  ;;  %4720 = vmatmul.mubr.f32.vlgmr.msra.gmra.mxu0 %v5186_v40 }
 0x195   :  { %v1199_v1 = vmax.f32 %v1197_v14, 0.0  ;;  %v1364_v19 = vadd.f32 %v1363_v55, %v1288_v38  ;;  %v1585_v20 = vpop.f32.mrf.mxu0  ;;  %4728 = vmatpush3.msra.mxu0 %v2247_v12  ;;  %v2249_v17 = vand.u32 4294901760, %v2248_v16  ;;  %4729 = vmatprep.mubr.msk.f32.mxu0 %vm4921_vm2, %v4920_v8 }
 0x196   :  { %v4656_v48 = vpop.f32.mrf.mxu1  ;;  %4737 = vmatprep.subr.mxu0 %v4920_v8 }
 0x197   :  { %v1201_v23 = vmin.f32 %v1199_v1, 6.0  ;;  %v4671_v25 = vpop.f32.mrf.mxu0  ;;  %4713 = vmatpush3.msra.mxu1 %v2249_v17  ;;  %v1438_v26 = vadd.f32 %v1437_v11, %v1364_v19 }
 0x198   :  { %v1511_v27 = vpop.f32.mrf.mxu1  ;;  %4715 = vmatmul.mubr.f32.vlgmr.msra.gmra.mxu1 %v5183_v33  ;;  %4722 = vmatprep.subr.mxu1 %v4920_v8 }
 0x199   :  { %v1203_v28 = vmul.f32 %v1201_v23, %v1193_v10  ;;  %v1512_v29 = vadd.f32 %v1511_v27, %v1438_v26  ;;  %v1742_v24 = vpop.f32.mrf.mxu0  ;;  %4723 = vmatpush3.msra.mxu1 %v2169_v56  ;;  %4724 = vmatprep.mubr.msk.f32.mxu1 %vm4921_vm2, %v4920_v8  ;;  %v3121_v10 = vand.u32 4294901760, %v3120_v4  ;;  %v2132_v23 = vpop.permute.xlu1 %2131 }
 0x19a   :  { %v4666_v31 = vpop.f32.mrf.mxu1  ;;  %4732 = vmatprep.subr.mxu1 %v4920_v8  ;;  %4730 = vmatmul.mubr.f32.vlgmr.msra.gmra.mxu0 %v5183_v33  ;;  %v1743_v47 = vadd.f32 %v1742_v24, %v5176_v21 }
 0x19b   :  { %v1205_v34 = vmul.f32 0.16666667, %v1203_v28  ;;  %v1586_v35 = vadd.f32 %v1585_v20, %v1512_v29  ;;  %4739 = vmatprep.mubr.msk.f32.mxu0 %vm4921_vm2, %v4920_v8  ;;  %v4681_v36 = vpop.f32.mrf.mxu0 }
 0x19c   :  { %v1657_v37 = vpop.f32.mrf.mxu1  ;;  %4725 = vmatmul.mubr.f32.vlgmr.msra.gmra.mxu1 %v5189_v46 }
 0x19d   :  { %v2615_v39 = vand.u32 4294901760, %v1205_v34  ;;  %v1658_v41 = vadd.f32 %v1657_v37, %v1586_v35  ;;  %4733 = vmatpush3.msra.mxu1 %v2169_v56  ;;  %4734 = vmatprep.mubr.msk.f32.mxu1 %vm4921_vm2, %v4920_v8 }
 0x19e   :  { %v4676_v43 = vpop.f32.mrf.mxu1  ;;  %v1892_v44 = vpop.f32.mrf.mxu0  ;;  %4742 = vmatprep.subr.mxu1 %v4920_v8 }
 0x19f   :  { %v2692_v45 = vsub.f32 %v1205_v34, %v2615_v39  ;;  %v2116_v50 = vadd.f32 3.0, %v1658_v41  ;;  %4738 = vmatpush3.msra.mxu0 %v2615_v39 }
 0x1a0   :  { %v1818_v51 = vpop.f32.mrf.mxu1  ;;  %4735 = vmatmul.mubr.f32.vlgmr.msra.gmra.mxu1 %v5183_v33  ;;  %4740 = vmatmul.mubr.f32.vlgmr.msra.gmra.mxu0 %v5194_v52  ;;  %v4691_v53 = vpop.f32.mrf.mxu0 }
 0x1a1   :  { %v2118_v54 = vmax.f32 %v2116_v50, 0.0  ;;  %v1819_v57 = vadd.f32 %v1818_v51, %v1743_v47  ;;  %4747 = vmatprep.subr.mxu0 %v4920_v8  ;;  %4749 = vmatprep.mubr.msk.f32.mxu0 %vm4921_vm2, %v4920_v8  ;;  %v2693_v58 = vand.u32 4294901760, %v2692_v45 }
 0x1a2   :  { %4748 = vmatpush3.msra.mxu0 %v2692_v45  ;;  %v4686_v21 = vpop.f32.mrf.mxu1  ;;  %v2040_v60 = vpop.f32.mrf.mxu0  ;;  %4744 = vmatprep.mubr.msk.f32.mxu1 %vm4921_vm2, %v4920_v8 }
 0x1a3   :  { %v2120_v61 = vmin.f32 %v2118_v54, 6.0  ;;  %v1893_v62 = vadd.f32 %v1892_v44, %v1819_v57  ;;  %4757 = vmatprep.subr.mxu0 %v4920_v8  ;;  %v2694_v63 = vsub.f32 %v2692_v45, %v2693_v58 }
 0x1a4   :  { %v1966_v0 = vpop.f32.mrf.mxu1  ;;  %4750 = vmatmul.mubr.f32.vlgmr.msra.gmra.mxu0 %v5186_v40  ;;  %v4701_v2 = vpop.f32.mrf.mxu0 }
 0x1a5   :  { %v2122_v52 = vmul.f32 %v2120_v61, %v1658_v41  ;;  %v1967_v56 = vadd.f32 %v1966_v0, %v1893_v62  ;;  %4758 = vmatpush3.msra.mxu0 %v2693_v58  ;;  %v2695_v3 = vand.u32 4294901760, %v2694_v63  ;;  %4759 = vmatprep.mubr.msk.f32.mxu0 %vm4921_vm2, %v4920_v8 }
 0x1a6   :  { %v4696_v5 = vpop.f32.mrf.mxu1  ;;  %4767 = vmatprep.subr.mxu0 %v4920_v8 }
 0x1a7   :  { %v2124_v32 = vmul.f32 0.16666667, %v2122_v52  ;;  %v2041_v6 = vadd.f32 %v2040_v60, %v1967_v56  ;;  %4743 = vmatpush3.msra.mxu1 %v2695_v3 }
 0x1a8   :  { %v2112_v7 = vpop.f32.mrf.mxu1  ;;  %4745 = vmatmul.mubr.f32.vlgmr.msra.gmra.mxu1 %v5183_v33  ;;  %4752 = vmatprep.subr.mxu1 %v4920_v8 }
 0x1a9   :  { %v3082_v40 = vand.u32 4294901760, %v2124_v32  ;;  %v2113_v9 = vadd.f32 %v2112_v7, %v2041_v6  ;;  %4760 = vmatmul.mubr.f32.vlgmr.msra.gmra.mxu0 %v5183_v33  ;;  %4753 = vmatpush3.msra.mxu1 %v2615_v39 }
 0x1aa   :  { %4754 = vmatprep.mubr.msk.f32.mxu1 %vm4921_vm2, %v4920_v8  ;;  %4762 = vmatprep.subr.mxu1 %v4920_v8  ;;  %v4706_v11 = vpop.f32.mrf.mxu1 }
 0x1ab   :  { %v3159_v12 = vsub.f32 %v2124_v32, %v3082_v40  ;;  %v2117_v13 = vadd.f32 3.0, %v2113_v9  ;;  %4768 = vmatpush3.msra.mxu0 %v3082_v40  ;;  %4769 = vmatprep.mubr.msk.f32.mxu0 %vm4921_vm2, %v4920_v8  ;;  %v3046_v32 = vpop.permute.xlu1 %3045 }
 0x1ac   :  { %4755 = vmatmul.mubr.f32.vlgmr.msra.gmra.mxu1 %v5189_v46  ;;  %4777 = vmatprep.subr.mxu0 %v4920_v8 }
 0x1ad   :  { %v2119_v38 = vmax.f32 %v2117_v13, 0.0  ;;  %4763 = vmatpush3.msra.mxu1 %v2615_v39  ;;  %4770 = vmatmul.mubr.f32.vlgmr.msra.gmra.mxu0 %v3121_v10  ;;  %v3160_v14 = vand.u32 4294901760, %v3159_v12 }
 0x1ae   :  { %4778 = vmatpush3.msra.mxu0 %v3159_v12  ;;  %4764 = vmatprep.mubr.msk.f32.mxu1 %vm4921_vm2, %v4920_v8 }
 0x1af   :  { %v2121_v15 = vmin.f32 %v2119_v38, 6.0  ;;  %4779 = vmatprep.mubr.msk.f32.mxu0 %vm4921_vm2, %v4920_v8  ;;  %4787 = vmatprep.subr.mxu0 %v4920_v8  ;;  %v3161_v16 = vsub.f32 %v3159_v12, %v3160_v14 }
 0x1b0   :  { %4765 = vmatmul.mubr.f32.vlgmr.msra.gmra.mxu1 %v5183_v33  ;;  %4772 = vmatprep.subr.mxu1 %v4920_v8 }
 0x1b1   :  { %v2123_v46 = vmul.f32 %v2121_v15, %v2113_v9  ;;  %4780 = vmatmul.mubr.f32.vlgmr.msra.gmra.mxu0 %v5224_v42  ;;  %v3162_v18 = vand.u32 4294901760, %v3161_v16  ;;  %4774 = vmatprep.mubr.msk.f32.mxu1 %vm4921_vm2, %v4920_v8 }
 0x1b2   :  { %4788 = vmatpush3.msra.mxu0 %v3160_v14  ;;  %4789 = vmatprep.mubr.msk.f32.mxu0 %vm4921_vm2, %v4920_v8 }
 0x1b3   :  { %v2125_v55 = vmul.f32 0.16666667, %v2123_v46  ;;  %4773 = vmatpush3.msra.mxu1 %v3162_v18  ;;  %4797 = vmatprep.subr.mxu0 %v4920_v8 }
 0x1b4   :  { %4775 = vmatmul.mubr.f32.vlgmr.msra.gmra.mxu1 %v5214_v30  ;;  %4782 = vmatprep.subr.mxu1 %v4920_v8 }
 0x1b5   :  { %v3528_v33 = vand.u32 4294901760, %v2125_v55  ;;  %4790 = vmatmul.mubr.f32.vlgmr.msra.gmra.mxu0 %v5214_v30  ;;  %4783 = vmatpush3.msra.mxu1 %v3082_v40 }
 0x1b6   :  { %4784 = vmatprep.mubr.msk.f32.mxu1 %vm4921_vm2, %v4920_v8  ;;  %4792 = vmatprep.subr.mxu1 %v4920_v8 }
 0x1b7   :  { %v3605_v1 = vsub.f32 %v2125_v55, %v3528_v33  ;;  %4798 = vmatpush3.msra.mxu0 %v3528_v33  ;;  %4799 = vmatprep.mubr.msk.f32.mxu0 %vm4921_vm2, %v4920_v8 }
 0x1b8   :  { %4785 = vmatmul.mubr.f32.vlgmr.msra.gmra.mxu1 %v5234_v59  ;;  %4807 = vmatprep.subr.mxu0 %v4920_v8 }
 0x1b9   :  { %4793 = vmatpush3.msra.mxu1 %v3082_v40  ;;  %4800 = vmatmul.mubr.f32.vlgmr.msra.gmra.mxu0 %v3121_v10  ;;  %v3606_v19 = vand.u32 4294901760, %v3605_v1 }
 0x1ba   :  { %4808 = vmatpush3.msra.mxu0 %v3605_v1  ;;  %4794 = vmatprep.mubr.msk.f32.mxu1 %vm4921_vm2, %v4920_v8 }
 0x1bb   :  { %4809 = vmatprep.mubr.msk.f32.mxu0 %vm4921_vm2, %v4920_v8  ;;  %4817 = vmatprep.subr.mxu0 %v4920_v8  ;;  %v3607_v20 = vsub.f32 %v3605_v1, %v3606_v19 }
 0x1bc   :  { %4795 = vmatmul.mubr.f32.vlgmr.msra.gmra.mxu1 %v5214_v30  ;;  %4802 = vmatprep.subr.mxu1 %v4920_v8 }
 0x1bd   :  { %4810 = vmatmul.mubr.f32.vlgmr.msra.gmra.mxu0 %v5224_v42  ;;  %v3608_v17 = vand.u32 4294901760, %v3607_v20  ;;  %4804 = vmatprep.mubr.msk.f32.mxu1 %vm4921_vm2, %v4920_v8 }
 0x1be   :  { %4818 = vmatpush3.msra.mxu0 %v3606_v19  ;;  %4819 = vmatprep.mubr.msk.f32.mxu0 %vm4921_vm2, %v4920_v8 }
 0x1bf   :  { %4803 = vmatpush3.msra.mxu1 %v3608_v17 }
 0x1c0   :  { %4805 = vmatmul.mubr.f32.vlgmr.msra.gmra.mxu1 %v5214_v30  ;;  %4812 = vmatprep.subr.mxu1 %v4920_v8 }
 0x1c1   :  { %4813 = vmatpush3.msra.mxu1 %v3528_v33  ;;  %4814 = vmatprep.mubr.msk.f32.mxu1 %vm4921_vm2, %v4920_v8 }
 0x1c2   :  { %4822 = vmatprep.subr.mxu1 %v4920_v8  ;;  %4820 = vmatmul.mubr.f32.vlgmr.msra.gmra.mxu0 %v5214_v30 }
 0x1c4   :  { %4815 = vmatmul.mubr.f32.vlgmr.msra.gmra.mxu1 %v5234_v59 }
 0x1c5   :  { %4823 = vmatpush3.msra.mxu1 %v3528_v33  ;;  %4824 = vmatprep.mubr.msk.f32.mxu1 %vm4921_vm2, %v4920_v8 }
 0x1c8   :  { %4825 = vmatmul.mubr.f32.vlgmr.msra.gmra.mxu1 %v5214_v30 }
 0x250   :  { %v2210_v48 = vpop.f32.mrf.mxu0 }
 0x251   :  { %v2211_v26 = vadd.f32 %v2210_v48, %v2132_v23 }
 0x252   :  { %v4711_v22 = vpop.f32.mrf.mxu0 }
 0x254   :  { %v2360_v25 = vpop.f32.mrf.mxu0 }
 0x256   :  { %v4721_v27 = vpop.f32.mrf.mxu0 }
 0x257   :  { %v5302_v27 = vsub.s32 0, %v5020_v49 }
 0x258   :  { %v2286_v28 = vpop.f32.mrf.mxu1 }
 0x259   :  { %v2287_v29 = vadd.f32 %v2286_v28, %v2211_v26  ;;  %v4096_v26 = vsub.s32 3, %v5020_v49 }
 0x25a   :  { %v4716_v24 = vpop.f32.mrf.mxu1  ;;  %v2508_v31 = vpop.f32.mrf.mxu0 }
 0x25b   :  { %v2361_v34 = vadd.f32 %v2360_v25, %v2287_v29 }
 0x25c   :  { %v2434_v35 = vpop.f32.mrf.mxu1  ;;  %v4731_v36 = vpop.f32.mrf.mxu0 }
 0x25d   :  { %v2435_v37 = vadd.f32 %v2434_v35, %v2361_v34 }
 0x25e   :  { %v4726_v39 = vpop.f32.mrf.mxu1 }
 0x25f   :  { %v2509_v41 = vadd.f32 %v2508_v31, %v2435_v37 }
 0x260   :  { %v2580_v42 = vpop.f32.mrf.mxu1  ;;  %v2656_v43 = vpop.f32.mrf.mxu0 }
 0x261   :  { %v2581_v44 = vadd.f32 %v2580_v42, %v2509_v41  ;;  %v2657_v53 = vadd.f32 %v2656_v43, %v2132_v23 }
 0x262   :  { %v4741_v30 = vpop.f32.mrf.mxu0  ;;  %v4736_v45 = vpop.f32.mrf.mxu1 }
 0x263   :  { %v4487_v47 = vmul.f32 -1.442695, %v2581_v44 }
 0x264   :  { %v2806_v50 = vpop.f32.mrf.mxu0 }
 0x265   :  { %4841 = vpow2.f32 %v4487_v47  ;;  %v4074_v47 = vsub.s32 1, %v5020_v49 }
 0x266   :  { %v4751_v51 = vpop.f32.mrf.mxu0 }
 0x268   :  { %v2732_v54 = vpop.f32.mrf.mxu1 }
 0x269   :  { %v2733_v57 = vadd.f32 %v2732_v54, %v2657_v53  ;;  %v2954_v58 = vpop.f32.mrf.mxu0 }
 0x26a   :  { %v4746_v59 = vpop.f32.mrf.mxu1 }
 0x26b   :  { %v4761_v21 = vpop.f32.mrf.mxu0  ;;  %v2807_v60 = vadd.f32 %v2806_v50, %v2733_v57 }
 0x26c   :  { %v2880_v61 = vpop.f32.mrf.mxu1  ;;  %v4085_v21 = vsub.s32 2, %v5020_v49 }
 0x26d   :  { %v2881_v62 = vadd.f32 %v2880_v61, %v2807_v60  ;;  %v3123_v63 = vpop.f32.mrf.mxu0 }
 0x26e   :  { %v4756_v0 = vpop.f32.mrf.mxu1  ;;  %v3124_v40 = vadd.f32 %v3123_v63, %v3046_v32 }
 0x26f   :  { %v4771_v2 = vpop.f32.mrf.mxu0  ;;  %v2955_v52 = vadd.f32 %v2954_v58, %v2881_v62  ;;  %v4923_v62 = vmov 1966171168  }
 0x270   :  { %v3026_v56 = vpop.f32.mrf.mxu1  ;;  %v3958_v63 = vunpack.c.l.s4 %v4923_v62  ;;  %v4861_v62 = vld [vmem:[#allocation2 + $0x28] sm:$0xff] }
 0x271   :  { %v3027_v3 = vadd.f32 %v3026_v56, %v2955_v52  ;;  %v3273_v4 = vpop.f32.mrf.mxu0 }
 0x272   :  { %v4842_v5 = vpop.eup %4841  ;;  %v4766_v6 = vpop.f32.mrf.mxu1  ;;  %v3959_v2 = vunpack.c.0.s8 %v3958_v63 }
 0x273   :  { %v3036_v7 = vadd.f32 1.0, %v4842_v5  ;;  %v4488_v9 = vmul.f32 -1.442695, %v3027_v3  ;;  %v4781_v10 = vpop.f32.mrf.mxu0 }
 0x274   :  { %v3199_v11 = vpop.f32.mrf.mxu1 }
 0x275   :  { %4843 = vrcp.f32 %v3036_v7  ;;  %v3200_v12 = vadd.f32 %v3199_v11, %v3124_v40  ;;  %v3421_v13 = vpop.f32.mrf.mxu0 }
 0x276   :  { %4845 = vpow2.f32 %v4488_v9  ;;  %v4776_v38 = vpop.f32.mrf.mxu1 }
 0x277   :  { %v4791_v14 = vpop.f32.mrf.mxu0  ;;  %v3274_v15 = vadd.f32 %v3273_v4, %v3200_v12  ;;  %v3962_v4 = vsub.s32 %v3959_v2, %v5020_v49 }
 0x278   :  { %v3347_v16 = vpop.f32.mrf.mxu1 }
 0x279   :  { %v3348_v46 = vadd.f32 %v3347_v16, %v3274_v15  ;;  %v3569_v18 = vpop.f32.mrf.mxu0 }
 0x27a   :  { %v4786_v55 = vpop.f32.mrf.mxu1  ;;  %v3570_v22 = vadd.f32 %v3569_v18, %v3046_v32 }
 0x27b   :  { %v3422_v33 = vadd.f32 %v3421_v13, %v3348_v46  ;;  %v4801_v1 = vpop.f32.mrf.mxu0 }
 0x27c   :  { %v3493_v19 = vpop.f32.mrf.mxu1 }
 0x27d   :  { %v3494_v20 = vadd.f32 %v3493_v19, %v3422_v33  ;;  %v3719_v17 = vpop.f32.mrf.mxu0 }
 0x27e   :  { %v4796_v48 = vpop.f32.mrf.mxu1 }
 0x27f   :  { %v4489_v23 = vmul.f32 -1.442695, %v3494_v20  ;;  %v4811_v25 = vpop.f32.mrf.mxu0 }
 0x280   :  { %v3645_v28 = vpop.f32.mrf.mxu1 }
 0x281   :  { %4847 = vpow2.f32 %v4489_v23  ;;  %v3646_v29 = vadd.f32 %v3645_v28, %v3570_v22  ;;  %v4857_v28 = vld [vmem:[#allocation2 + $0x30] sm:$0xff] }
 0x282   :  { %v4844_v24 = vpop.eup %4843  ;;  %v4806_v31 = vpop.f32.mrf.mxu1 }
 0x283   :  { %v3867_v34 = vpop.f32.mrf.mxu0  ;;  %v4846_v35 = vpop.eup %4845  ;;  %v3720_v36 = vadd.f32 %v3719_v17, %v3646_v29  ;;  %v4097_v37 = vrot.slane %v4844_v24, %v4096_v26  ;;  %v4064_v39 = vrot.slane %v4844_v24, %v5302_v27  ;;  %v4075_v57 = vrot.slane %v4844_v24, %v4074_v47 }
 0x284   :  { %v3037_v41 = vadd.f32 1.0, %v4846_v35  ;;  %v3793_v42 = vpop.f32.mrf.mxu1  ;;  %v4086_v61 = vrot.slane %v4844_v24, %v4085_v21  ;;  %v4858_v24 = vld [vmem:[#allocation2 + $0x10] sm:$0xff] }
 0x285   :  { %v4821_v43 = vpop.f32.mrf.mxu0  ;;  %v3794_v44 = vadd.f32 %v3793_v42, %v3720_v36  ;;  %4099 = vbcast.lane.b32.xlu0 %v4097_v37, 256  ;;  %4066 = vbcast.lane.b32.xlu1 %v4064_v39, 256 }
 0x286   :  { %4849 = vrcp.f32 %v3037_v41  ;;  %v4816_v30 = vpop.f32.mrf.mxu1 }
 0x287   :  { %v3868_v45 = vadd.f32 %v3867_v34, %v3794_v44  ;;  %v4924_v34 = vmov 1983009808   ;;  %v4925_v30 = vmov 1934713408  }
 0x288   :  { %v3939_v50 = vpop.f32.mrf.mxu1  ;;  %v4168_v35 = vunpack.c.l.s4 %v4924_v34 }
 0x289   :  { %v3940_v51 = vadd.f32 %v3939_v50, %v3868_v45  ;;  %4070 = vbcast.lane.b32.xlu1 %v4064_v39, 264  ;;  %v4200_v45 = vunpack.c.l.s4 %v4925_v30  ;;  %v4860_v50 = vld [vmem:[#allocation2 + $0x20] sm:$0xff] }
 0x28a   :  { %v4826_v53 = vpop.f32.mrf.mxu1  ;;  %v4169_v43 = vunpack.c.0.s8 %v4168_v35 }
 0x28b   :  { %v4490_v54 = vmul.f32 -1.442695, %v3940_v51 }
 0x28c   :  { %v5326_v53 = vsub.s32 %v4169_v43, %v5020_v49 }
 0x28d   :  { %4851 = vpow2.f32 %v4490_v54  ;;  %4077 = vbcast.lane.b32.xlu1 %v4075_v57, 256  ;;  %v4201_v54 = vunpack.c.0.s8 %v4200_v45  ;;  %v4867_v45 = vld [vmem:[#allocation2 + $0x50] sm:$0xff] }
 0x28e   :  { %v4848_v58 = vpop.eup %4847 }
 0x28f   :  { %v3949_v59 = vadd.f32 1.0, %v4848_v58 }
 0x291   :  { %4853 = vrcp.f32 %v3949_v59  ;;  %4081 = vbcast.lane.b32.xlu1 %v4075_v57, 264 }
 0x293   :  { %v4850_v60 = vpop.eup %4849 }
 0x294   :  { %v4108_v0 = vrot.slane %v4850_v60, %v5302_v27  ;;  %v4119_v52 = vrot.slane %v4850_v60, %v4074_v47  ;;  %v4130_v5 = vrot.slane %v4850_v60, %v4085_v21  ;;  %v4141_v7 = vrot.slane %v4850_v60, %v4096_v26 }
 0x295   :  { %4088 = vbcast.lane.b32.xlu1 %v4086_v61, 256 }
 0x296   :  { %4110 = vbcast.lane.b32.xlu0 %v4108_v0, 256 }
 0x299   :  { %4092 = vbcast.lane.b32.xlu1 %v4086_v61, 264 }
 0x29a   :  { %v4852_v56 = vpop.eup %4851  ;;  %4121 = vbcast.lane.b32.xlu0 %v4119_v52, 256 }
 0x29b   :  { %v3950_v3 = vadd.f32 1.0, %v4852_v56  ;;  %v5330_v56 = vsub.s32 %v4201_v54, %v5020_v49 }
 0x29d   :  { %4855 = vrcp.f32 %v3950_v3  ;;  %4103 = vbcast.lane.b32.xlu1 %v4097_v37, 264 }
 0x29e   :  { %v4854_v32 = vpop.eup %4853  ;;  %4132 = vbcast.lane.b32.xlu0 %v4130_v5, 256 }
 0x29f   :  { %v3963_v6 = vrot.slane %v4854_v32, %v3962_v4 }
 0x2a1   :  { %4114 = vbcast.lane.b32.xlu1 %v4108_v0, 264  ;;  %v3964_v40 = vcombine.high %v3963_v6, %v3963_v6  ;;  %v3971_v9 = vrot.slane %v3963_v6, %v3962_v4  ;;  %v4862_v0 = vld [vmem:[#allocation2 + $0x8] sm:$0xff] }
 0x2a2   :  { %4143 = vbcast.lane.b32.xlu0 %v4141_v7, 256 }
 0x2a3   :  { %v3978_v10 = vrot.slane %v3964_v40, %v3962_v4  ;;  %v4008_v11 = vrot.slane %v3971_v9, %v5302_v27  ;;  %v3979_v12 = vcombine.high %v3971_v9, %v3971_v9  ;;  %v4863_v9 = vld [vmem:[#allocation2 + $0x18] sm:$0xff] }
 0x2a5   :  { %4125 = vbcast.lane.b32.xlu1 %v4119_v52, 264  ;;  %v3980_v13 = vcombine.high %v3978_v10, %v3978_v10  ;;  %v4012_v38 = vrot.slane %v3978_v10, %v5302_v27  ;;  %v4016_v14 = vrot.slane %v3979_v12, %v5302_v27  ;;  %v4046_v2 = vmul.f32 %v4862_v0, %v4008_v11  ;;  %v4864_v12 = vld [vmem:[#allocation2 + $0x38] sm:$0xff] }
 0x2a7   :  { %v4020_v15 = vrot.slane %v3980_v13, %v5302_v27  ;;  %v4047_v31 = vmul.f32 %v4858_v24, %v4012_v38  ;;  %v4049_v51 = vmul.f32 %v4860_v50, %v4016_v14  ;;  %v4050_v63 = vmul.f32 %v4861_v62, %v4016_v14  ;;  %v4868_v50 = vld [vmem:[#allocation2 + $0x70] sm:$0xff] }
 0x2a8   :  { %v4048_v10 = vmul.f32 %v4863_v9, %v4012_v38 }
 0x2a9   :  { %4136 = vbcast.lane.b32.xlu1 %v4130_v5, 264  ;;  %v4051_v29 = vmul.f32 %v4857_v28, %v4020_v15 }
 0x2aa   :  { %v4856_v16 = vpop.eup %4855 }
 0x2ab   :  { %v3987_v46 = vrot.slane %v4856_v16, %v3962_v4 }
 0x2ad   :  { %4147 = vbcast.lane.b32.xlu1 %v4141_v7, 264  ;;  %v3995_v18 = vrot.slane %v3987_v46, %v3962_v4  ;;  %v3988_v55 = vcombine.high %v3987_v46, %v3987_v46  ;;  %v4865_v46 = vld [vmem:[#allocation2 + $0x40] sm:$0xff] }
 0x2af   :  { %v5314_v33 = vrot.slane %v3995_v18, %v5302_v27  ;;  %v4002_v1 = vrot.slane %v3988_v55, %v3962_v4  ;;  %v4003_v19 = vcombine.high %v3995_v18, %v3995_v18 }
 0x2b1   :  { %v5317_v20 = vrot.slane %v4002_v1, %v5302_v27  ;;  %v5320_v17 = vrot.slane %v4003_v19, %v5302_v27  ;;  %v4004_v48 = vcombine.high %v4002_v1, %v4002_v1  ;;  %v4053_v18 = vmul.f32 %v4865_v46, %v5314_v33 }
 0x2b3   :  { %v5323_v22 = vrot.slane %v4004_v48, %v5302_v27  ;;  %v4859_v27 = vld [vmem:[#allocation2] sm:$0xff] }
 0x2b4   :  { %v4045_v47 = vmul.f32 %v4859_v27, %v4008_v11  ;;  %v4052_v11 = vmul.f32 %v4864_v12, %v4020_v15  ;;  %v4866_v48 = vld [vmem:[#allocation2 + $0x60] sm:$0xff]  ;;  %v4055_v27 = vmul.f32 %v4867_v45, %v5317_v20 }
 0x2f7   :  { %v4067_v23 = vpop.permute.xlu1 %4066  ;;  %v4100_v26 = vpop.permute.xlu0 %4099 }
 0x2f8   :  { %v4155_v37 = vmul.f32 %v4100_v26, %v4051_v29  ;;  %v4149_v58 = vmul.f32 %v4067_v23, %v4045_v47  ;;  %v4057_v23 = vmul.f32 %v4866_v48, %v5320_v17 }
 0x2fb   :  { %v4071_v25 = vpop.permute.xlu1 %4070 }
 0x2fc   :  { %v4150_v40 = vmul.f32 %v4071_v25, %v4046_v2 }
 0x2ff   :  { %v4078_v36 = vpop.permute.xlu1 %4077 }
 0x300   :  { %v4151_v39 = vmul.f32 %v4078_v36, %v4047_v31 }
 0x302   :  { %v4181_v41 = vcombine.low %v4151_v39, %v4155_v37  ;;  %v4182_v42 = vcombine.high %v4151_v39, %v4155_v37 }
 0x303   :  { %v4082_v44 = vpop.permute.xlu1 %4081 }
 0x304   :  { %v4189_v52 = vrot.slane %v4181_v41, %v5326_v53  ;;  %v4196_v4 = vrot.slane %v4182_v42, %v5326_v53  ;;  %v4152_v29 = vmul.f32 %v4082_v44, %v4048_v10 }
 0x307   :  { %v4089_v57 = vpop.permute.xlu1 %4088 }
 0x308   :  { %v4153_v59 = vmul.f32 %v4089_v57, %v4049_v51  ;;  %v4111_v21 = vpop.permute.xlu0 %4110  ;;  %v4059_v51 = vmul.f32 %v4868_v50, %v5323_v22 }
 0x309   :  { %v4157_v24 = vmul.f32 %v4111_v21, %v4053_v18 }
 0x30a   :  { %v4165_v60 = vcombine.low %v4149_v58, %v4153_v59  ;;  %v4166_v61 = vcombine.high %v4149_v58, %v4153_v59 }
 0x30b   :  { %v4093_v3 = vpop.permute.xlu1 %4092 }
 0x30c   :  { %v4173_v5 = vrot.slane %v4165_v60, %v5326_v53  ;;  %v4180_v32 = vrot.slane %v4166_v61, %v5326_v53  ;;  %v4154_v6 = vmul.f32 %v4093_v3, %v4050_v63  ;;  %v4122_v7 = vpop.permute.xlu0 %4121 }
 0x30d   :  { %v4159_v21 = vmul.f32 %v4122_v7, %v4055_v27 }
 0x30e   :  { %v4197_v13 = vcombine.low %v4173_v5, %v4189_v52  ;;  %v4198_v14 = vcombine.high %v4173_v5, %v4189_v52  ;;  %v4213_v16 = vcombine.low %v4180_v32, %v4196_v4  ;;  %v4214_v49 = vcombine.high %v4180_v32, %v4196_v4  ;;  %v4869_v52 = vld [vmem:[#allocation2 + $0x48] sm:$0xff] }
 0x30f   :  { %v4233_v55 = vcombine.low %v4150_v40, %v4154_v6  ;;  %v4234_v1 = vcombine.high %v4150_v40, %v4154_v6  ;;  %v4104_v19 = vpop.permute.xlu1 %4103  ;;  %v4054_v3 = vmul.f32 %v4869_v52, %v5314_v33  ;;  %v4870_v32 = vld [vmem:[#allocation2 + $0x68] sm:$0xff] }
 0x310   :  { %v4205_v25 = vrot.slane %v4197_v13, %v5330_v56  ;;  %v4212_v38 = vrot.slane %v4198_v14, %v5330_v56  ;;  %v4221_v26 = vrot.slane %v4213_v16, %v5330_v56  ;;  %v4228_v15 = vrot.slane %v4214_v49, %v5330_v56  ;;  %v4133_v28 = vpop.permute.xlu0 %4132 }
 0x311   :  { %v4156_v31 = vmul.f32 %v4104_v19, %v4052_v11  ;;  %v4161_v34 = vmul.f32 %v4133_v28, %v4057_v23  ;;  %v4241_v54 = vrot.slane %v4233_v55, %v5326_v53  ;;  %v4248_v57 = vrot.slane %v4234_v1, %v5326_v53  ;;  %v4871_v28 = vld [vmem:[#allocation2 + $0x58] sm:$0xff] }
 0x312   :  { %v4229_v35 = vcombine.high %v4205_v25, %v4920_v8  ;;  %v4230_v36 = vcombine.high %v4212_v38, %v4920_v8  ;;  %v4231_v37 = vcombine.high %v4221_v26, %v4920_v8  ;;  %v4232_v39 = vcombine.high %v4228_v15, %v4920_v8  ;;  %4438 = vst.msk [vmem:[#allocation5] sm:$0xf] %vm4437_vm9, %v4205_v25 }
 0x313   :  { %4440 = vst.msk [vmem:[#allocation5 + $0x8] sm:$0xf] %vm4437_vm9, %v4212_v38  ;;  %4442 = vst.msk [vmem:[#allocation5 + $0x10] sm:$0xf] %vm4437_vm9, %v4221_v26  ;;  %v4249_v41 = vcombine.low %v4152_v29, %v4156_v31  ;;  %v4250_v42 = vcombine.high %v4152_v29, %v4156_v31  ;;  %v4301_v43 = vcombine.low %v4157_v24, %v4161_v34  ;;  %v4115_v30 = vpop.permute.xlu1 %4114 }
 0x314   :  { %4444 = vst.msk [vmem:[#allocation5 + $0x18] sm:$0xf] %vm4437_vm9, %v4228_v15  ;;  %v4302_v44 = vcombine.high %v4157_v24, %v4161_v34  ;;  %4439 = vst.msk [vmem:[#allocation5 + $0x4] sm:$0xf] %vm4437_vm9, %v4229_v35  ;;  %v4144_v47 = vpop.permute.xlu0 %4143  ;;  %v4058_v6 = vmul.f32 %v4870_v32, %v5320_v17  ;;  %v4158_v48 = vmul.f32 %v4115_v30, %v4054_v3  ;;  %v4872_v35 = vld [vmem:[#allocation2 + $0x78] sm:$0xff] }
 0x315   :  { %4441 = vst.msk [vmem:[#allocation5 + $0xc] sm:$0xf] %vm4437_vm9, %v4230_v36  ;;  %4443 = vst.msk [vmem:[#allocation5 + $0x14] sm:$0xf] %vm4437_vm9, %v4231_v37  ;;  %v4257_v58 = vrot.slane %v4249_v41, %v5326_v53  ;;  %v4264_v59 = vrot.slane %v4250_v42, %v5326_v53  ;;  %v4163_v60 = vmul.f32 %v4144_v47, %v4059_v51 }
 0x316   :  { %4445 = vst.msk [vmem:[#allocation5 + $0x1c] sm:$0xf] %vm4437_vm9, %v4232_v39  ;;  %v4309_v12 = vrot.slane %v4301_v43, %v5326_v53  ;;  %v4316_v11 = vrot.slane %v4302_v44, %v5326_v53  ;;  %v4056_v29 = vmul.f32 %v4871_v28, %v5317_v20  ;;  %v4060_v36 = vmul.f32 %v4872_v35, %v5323_v22 }
 0x317   :  { %v4265_v61 = vcombine.low %v4241_v54, %v4257_v58  ;;  %v4266_v62 = vcombine.high %v4241_v54, %v4257_v58  ;;  %v4281_v63 = vcombine.low %v4248_v57, %v4264_v59  ;;  %v4282_v0 = vcombine.high %v4248_v57, %v4264_v59  ;;  %v4126_v2 = vpop.permute.xlu1 %4125 }
 0x318   :  { %v4317_v4 = vcombine.low %v4159_v21, %v4163_v60  ;;  %v4318_v5 = vcombine.high %v4159_v21, %v4163_v60  ;;  %v4160_v20 = vmul.f32 %v4126_v2, %v4056_v29 }
 0x319   :  { %v4273_v40 = vrot.slane %v4265_v61, %v5330_v56  ;;  %v4280_v9 = vrot.slane %v4266_v62, %v5330_v56  ;;  %v4289_v7 = vrot.slane %v4281_v63, %v5330_v56  ;;  %v4296_v10 = vrot.slane %v4282_v0, %v5330_v56 }
 0x31a   :  { %v4325_v13 = vrot.slane %v4317_v4, %v5326_v53  ;;  %v4332_v33 = vrot.slane %v4318_v5, %v5326_v53 }
 0x31b   :  { %v4297_v14 = vcombine.high %v4273_v40, %v4920_v8  ;;  %v4298_v17 = vcombine.high %v4280_v9, %v4920_v8  ;;  %v4299_v16 = vcombine.high %v4289_v7, %v4920_v8  ;;  %v4300_v49 = vcombine.high %v4296_v10, %v4920_v8  ;;  %4446 = vst.msk [vmem:[#allocation5 + $0x20] sm:$0xf] %vm4437_vm9, %v4273_v40  ;;  %v4137_v46 = vpop.permute.xlu1 %4136 }
 0x31c   :  { %4448 = vst.msk [vmem:[#allocation5 + $0x28] sm:$0xf] %vm4437_vm9, %v4280_v9  ;;  %4450 = vst.msk [vmem:[#allocation5 + $0x30] sm:$0xf] %vm4437_vm9, %v4289_v7  ;;  %v4333_v18 = vcombine.low %v4309_v12, %v4325_v13  ;;  %v4334_v55 = vcombine.high %v4309_v12, %v4325_v13  ;;  %v4349_v1 = vcombine.low %v4316_v11, %v4332_v33 }
 0x31d   :  { %4452 = vst.msk [vmem:[#allocation5 + $0x38] sm:$0xf] %vm4437_vm9, %v4296_v10  ;;  %v4350_v19 = vcombine.high %v4316_v11, %v4332_v33  ;;  %4447 = vst.msk [vmem:[#allocation5 + $0x24] sm:$0xf] %vm4437_vm9, %v4297_v14  ;;  %v4162_v23 = vmul.f32 %v4137_v46, %v4058_v6 }
 0x31e   :  { %4449 = vst.msk [vmem:[#allocation5 + $0x2c] sm:$0xf] %vm4437_vm9, %v4298_v17  ;;  %4451 = vst.msk [vmem:[#allocation5 + $0x34] sm:$0xf] %vm4437_vm9, %v4299_v16  ;;  %v4341_v25 = vrot.slane %v4333_v18, %v5330_v56  ;;  %v4348_v38 = vrot.slane %v4334_v55, %v5330_v56  ;;  %v4357_v26 = vrot.slane %v4349_v1, %v5330_v56 }
 0x31f   :  { %4453 = vst.msk [vmem:[#allocation5 + $0x3c] sm:$0xf] %vm4437_vm9, %v4300_v49  ;;  %v4364_v15 = vrot.slane %v4350_v19, %v5330_v56  ;;  %v4369_v24 = vcombine.low %v4158_v48, %v4162_v23  ;;  %v4370_v31 = vcombine.high %v4158_v48, %v4162_v23  ;;  %v4148_v34 = vpop.permute.xlu1 %4147 }
 0x320   :  { %v4365_v37 = vcombine.high %v4341_v25, %v4920_v8  ;;  %v4366_v39 = vcombine.high %v4348_v38, %v4920_v8  ;;  %v4367_v41 = vcombine.high %v4357_v26, %v4920_v8  ;;  %4454 = vst.msk [vmem:[#allocation5 + $0x40] sm:$0xf] %vm4437_vm9, %v4341_v25  ;;  %4456 = vst.msk [vmem:[#allocation5 + $0x48] sm:$0xf] %vm4437_vm9, %v4348_v38 }
 0x321   :  { %v4368_v42 = vcombine.high %v4364_v15, %v4920_v8  ;;  %4458 = vst.msk [vmem:[#allocation5 + $0x50] sm:$0xf] %vm4437_vm9, %v4357_v26  ;;  %4460 = vst.msk [vmem:[#allocation5 + $0x58] sm:$0xf] %vm4437_vm9, %v4364_v15  ;;  %v4164_v43 = vmul.f32 %v4148_v34, %v4060_v36  ;;  %v4377_v30 = vrot.slane %v4369_v24, %v5326_v53 }
 0x322   :  { %4455 = vst.msk [vmem:[#allocation5 + $0x44] sm:$0xf] %vm4437_vm9, %v4365_v37  ;;  %4457 = vst.msk [vmem:[#allocation5 + $0x4c] sm:$0xf] %vm4437_vm9, %v4366_v39  ;;  %v4384_v45 = vrot.slane %v4370_v31, %v5326_v53 }
 0x323   :  { %4459 = vst.msk [vmem:[#allocation5 + $0x54] sm:$0xf] %vm4437_vm9, %v4367_v41  ;;  %4461 = vst.msk [vmem:[#allocation5 + $0x5c] sm:$0xf] %vm4437_vm9, %v4368_v42  ;;  %v4385_v22 = vcombine.low %v4160_v20, %v4164_v43  ;;  %v4386_v44 = vcombine.high %v4160_v20, %v4164_v43 }
 0x325   :  { %v4393_v27 = vrot.slane %v4385_v22, %v5326_v53  ;;  %v4400_v47 = vrot.slane %v4386_v44, %v5326_v53 }
 0x327   :  { %v4401_v50 = vcombine.low %v4377_v30, %v4393_v27  ;;  %v4402_v51 = vcombine.high %v4377_v30, %v4393_v27  ;;  %v4417_v54 = vcombine.low %v4384_v45, %v4400_v47  ;;  %v4418_v57 = vcombine.high %v4384_v45, %v4400_v47 }
 0x329   :  { %v4409_v58 = vrot.slane %v4401_v50, %v5330_v56  ;;  %v4416_v59 = vrot.slane %v4402_v51, %v5330_v56  ;;  %v4425_v21 = vrot.slane %v4417_v54, %v5330_v56  ;;  %v4432_v60 = vrot.slane %v4418_v57, %v5330_v56 }
 0x32b   :  { %v4433_v61 = vcombine.high %v4409_v58, %v4920_v8  ;;  %v4434_v62 = vcombine.high %v4416_v59, %v4920_v8  ;;  %v4435_v53 = vcombine.high %v4425_v21, %v4920_v8  ;;  %v4436_v63 = vcombine.high %v4432_v60, %v4920_v8  ;;  %4462 = vst.msk [vmem:[#allocation5 + $0x60] sm:$0xf] %vm4437_vm9, %v4409_v58 }
 0x32c   :  { %4464 = vst.msk [vmem:[#allocation5 + $0x68] sm:$0xf] %vm4437_vm9, %v4416_v59  ;;  %4466 = vst.msk [vmem:[#allocation5 + $0x70] sm:$0xf] %vm4437_vm9, %v4425_v21 }
 0x32d   :  { %4468 = vst.msk [vmem:[#allocation5 + $0x78] sm:$0xf] %vm4437_vm9, %v4432_v60  ;;  %4463 = vst.msk [vmem:[#allocation5 + $0x64] sm:$0xf] %vm4437_vm9, %v4433_v61 }
 0x32e   :  { %4465 = vst.msk [vmem:[#allocation5 + $0x6c] sm:$0xf] %vm4437_vm9, %v4434_v62  ;;  %4467 = vst.msk [vmem:[#allocation5 + $0x74] sm:$0xf] %vm4437_vm9, %v4435_v53 }
 0x32f   :  { %4469 = vst.msk [vmem:[#allocation5 + $0x7c] sm:$0xf] %vm4437_vm9, %v4436_v63 }
 0x330   :  { %4904 = shalt.err (!%p4901_p9)
}
 0x331   :  { %s4927_s16 = smov 64   ;;  %s4928_s17 = smov 4  }
 0x332   :  { %4481 = dma.vmem_to_hbm [thread:$0]  %s4476_s6, 2048, %s5429_s7, [#allocation4], %s4927_s16, %s4927_s16, %s4928_s17  }
 0x333   :  { %4915 = dma.done.wait [#allocation4], 2048  }
 0x334   :  { %4916 = vsyncadd [#allocation4], 4294965248 }
 0x335   :  { %4485 = vsyncpa [#allocation3], 1 }
 0x336   :  { %4486 = vsyncpa [#allocation4], 1 }

</bundles_post_ra>
